<compile_context>
chip_gen: v5e
topology: v5e:2x2
jax: 0.10.0
libtpu: 0.0.40
codegen_flags: <defaults>
</compile_context>

<pallas_src>
import functools

import jax
import jax.numpy as jnp
from jax.experimental import pallas as pl
from jax.experimental.pallas import tpu as pltpu

D_IN, D_H, D_OUT = 2, 10, 1
LANES = 128


def mlp_kernel(x_ref, w1_ref, b1_ref, w2_ref, b2_ref, w3_ref, b3_ref, o_ref):
    """Fused MLP forward on one batch tile.

    x_ref : (2, tb, 128) VMEM  -- batch on sublanes+lanes, dense vreg slabs
    w*/b* : flat f32 SMEM      -- scalar reads (sld) + splat, no vreg gathers
    o_ref : (tb, 128)   VMEM   -- lane- and sublane-dense store
    """
    x0 = x_ref[0]                                   # (tb, 128)
    x1 = x_ref[1]                                   # (tb, 128)

    # Layer 1 (K=2) + ReLU: unrolled scalar FMAs on dense slabs.
    h1 = []
    for o in range(D_H):
        a = w1_ref[o * D_IN] * x0 + w1_ref[o * D_IN + 1] * x1 + b1_ref[o]
        h1.append(jnp.maximum(a, 0.0))

    # Layer 2 (10x10) + ReLU.  ~200 fully dense vreg FMAs per slab; kept on
    # the VPU (MXU offload would add stack/unstack copies for a K=10 matmul).
    h2 = []
    for o in range(D_H):
        a = b2_ref[o]
        for j in range(D_H):
            a = a + w2_ref[o * D_H + j] * h1[j]
        h2.append(jnp.maximum(a, 0.0))

    # Layer 3 (10 -> 1): scale-and-accumulate into a single dense slab.
    out = b3_ref[0]
    for j in range(D_H):
        out = out + w3_ref[j] * h2[j]

    o_ref[...] = out.astype(o_ref.dtype)


@functools.partial(jax.jit, static_argnames=("tb",))
def circle_model_v2(x, w1, b1, w2, b2, w3, b3, *, tb=64):
    """Forward pass of CircleModelV2.

    x: (N, 2) f32; weights in PyTorch nn.Linear layout:
    w1 (10, 2), b1 (10,), w2 (10, 10), b2 (10,), w3 (1, 10), b3 (1,).
    Returns (N, 1) f32.
    """
    N = x.shape[0]
    nb = pl.cdiv(N, LANES)                       # rows of 128 samples

    # Effective sublane tile: multiple of 8 (vreg constraint), capped so that
    # there are >=2 grid steps when there is enough work (v7x: 2 TensorCores).
    tb_eff = max(8, min(tb, 8 * pl.cdiv(pl.cdiv(nb, 2), 8)))
    nb_pad = pl.cdiv(nb, tb_eff) * tb_eff
    n_pad = nb_pad * LANES

    # Batch -> (sublane, lane) layout.  Cheap for 2 features; XLA fuses the
    # transpose + pad + reshape into one copy.
    xt = x.astype(jnp.float32).T                 # (2, N)
    if n_pad != N:
        xt = jnp.pad(xt, ((0, 0), (0, n_pad - N)))
    xt = xt.reshape(D_IN, nb_pad, LANES)         # (2, NB, 128)

    smem = pl.BlockSpec(memory_space=pltpu.MemorySpace.SMEM)
    f32flat = lambda a: a.astype(jnp.float32).reshape(-1)

    out = pl.pallas_call(
        mlp_kernel,
        out_shape=jax.ShapeDtypeStruct((nb_pad, LANES), jnp.float32),
        grid=(nb_pad // tb_eff,),
        in_specs=[
            pl.BlockSpec((D_IN, tb_eff, LANES), lambda i: (0, i, 0)),  # x tile
            smem, smem,                                                # layer 1
            smem, smem,                                                # layer 2
            smem, smem,                                                # layer 3
        ],
        out_specs=pl.BlockSpec((tb_eff, LANES), lambda i: (i, 0)),
        compiler_params=pltpu.CompilerParams(
            dimension_semantics=("parallel",),   # megacore split on v7x
        ),
    )(xt,
      f32flat(w1), f32flat(b1),
      f32flat(w2), f32flat(b2),
      f32flat(w3), f32flat(b3))

    return out.reshape(-1)[:N].reshape(N, 1)


def reference(x, w1, b1, w2, b2, w3, b3):
    hp = jax.lax.Precision.HIGHEST
    h = jnp.maximum(jnp.dot(x, w1.T, precision=hp) + b1, 0.0)
    h = jnp.maximum(jnp.dot(h, w2.T, precision=hp) + b2, 0.0)
    return jnp.dot(h, w3.T, precision=hp) + b3


if __name__ == "__main__":
    key = jax.random.PRNGKey(0)
    k_x, k1, k2, k3, k4, k5, k6 = jax.random.split(key, 7)

    N = 300   # deliberately NOT a multiple of 128 (exercises padding/slicing)

    x = jax.random.normal(k_x, (N, 2), dtype=jnp.float32)

    # Parameters in PyTorch nn.Linear layout: weight (out, in), bias (out,).
    w1 = jax.random.normal(k1, (10, 2), dtype=jnp.float32) * 0.5
    b1 = jax.random.normal(k2, (10,), dtype=jnp.float32) * 0.1
    w2 = jax.random.normal(k3, (10, 10), dtype=jnp.float32) * 0.3
    b2 = jax.random.normal(k4, (10,), dtype=jnp.float32) * 0.1
    w3 = jax.random.normal(k5, (1, 10), dtype=jnp.float32) * 0.5
    b3 = jax.random.normal(k6, (1,), dtype=jnp.float32) * 0.1

    out = circle_model_v2(x, w1, b1, w2, b2, w3, b3)
    out = jax.block_until_ready(out)

    ref = reference(x, w1, b1, w2, b2, w3, b3)
    assert out.shape == (N, 1), out.shape
    assert jnp.allclose(out, ref, atol=1e-5, rtol=1e-5), (
        float(jnp.max(jnp.abs(out - ref))))

    print("KERNEL_OK")
</pallas_src>

<mosaic_0001>
module attributes {stable_mosaic.version = 11 : i64} {
  func.func @mlp_kernel(%arg0: i32, %arg1: memref<2x8x128xf32, #tpu.memory_space<vmem>>, %arg2: memref<20xf32, #tpu.memory_space<smem>>, %arg3: memref<10xf32, #tpu.memory_space<smem>>, %arg4: memref<100xf32, #tpu.memory_space<smem>>, %arg5: memref<10xf32, #tpu.memory_space<smem>>, %arg6: memref<10xf32, #tpu.memory_space<smem>>, %arg7: memref<1xf32, #tpu.memory_space<smem>>, %arg8: memref<8x128xf32, #tpu.memory_space<vmem>>) attributes {dimension_semantics = [#tpu.dimension_semantics<parallel>], iteration_bounds = array<i64: 1>, scalar_prefetch = 0 : i64, scratch_operands = 0 : i64, tpu.core_type = #tpu.core_type<tc>, window_params = [{transform_indices = @transform_0, window_bounds = array<i64: 2, 8, 128>}, {transform_indices = @transform_1, window_bounds = array<i64: 20>}, {transform_indices = @transform_2, window_bounds = array<i64: 10>}, {transform_indices = @transform_3, window_bounds = array<i64: 100>}, {transform_indices = @transform_4, window_bounds = array<i64: 10>}, {transform_indices = @transform_5, window_bounds = array<i64: 10>}, {transform_indices = @transform_6, window_bounds = array<i64: 1>}, {transform_indices = @transform_7, window_bounds = array<i64: 8, 128>}]} {
    %c0 = arith.constant 0 : index
    %c0_0 = arith.constant 0 : index
    %c0_1 = arith.constant 0 : index
    %0 = vector.load %arg1[%c0, %c0_0, %c0_1] : memref<2x8x128xf32, #tpu.memory_space<vmem>>, vector<1x8x128xf32>
    %1 = vector.shape_cast %0 : vector<1x8x128xf32> to vector<8x128xf32>
    %c1 = arith.constant 1 : index
    %c0_2 = arith.constant 0 : index
    %c0_3 = arith.constant 0 : index
    %2 = vector.load %arg1[%c1, %c0_2, %c0_3] : memref<2x8x128xf32, #tpu.memory_space<vmem>>, vector<1x8x128xf32>
    %3 = vector.shape_cast %2 : vector<1x8x128xf32> to vector<8x128xf32>
    %c0_4 = arith.constant 0 : index
    %4 = memref.load %arg2[%c0_4] : memref<20xf32, #tpu.memory_space<smem>>
    %5 = vector.broadcast %4 : f32 to vector<8x128xf32>
    %6 = arith.mulf %5, %1 : vector<8x128xf32>
    %c1_5 = arith.constant 1 : index
    %7 = memref.load %arg2[%c1_5] : memref<20xf32, #tpu.memory_space<smem>>
    %8 = vector.broadcast %7 : f32 to vector<8x128xf32>
    %9 = arith.mulf %8, %3 : vector<8x128xf32>
    %10 = arith.addf %6, %9 : vector<8x128xf32>
    %c0_6 = arith.constant 0 : index
    %11 = memref.load %arg3[%c0_6] : memref<10xf32, #tpu.memory_space<smem>>
    %12 = vector.broadcast %11 : f32 to vector<8x128xf32>
    %13 = arith.addf %10, %12 : vector<8x128xf32>
    %cst = arith.constant 0.000000e+00 : f32
    %14 = vector.broadcast %cst : f32 to vector<8x128xf32>
    %15 = arith.maximumf %13, %14 : vector<8x128xf32>
    %c2 = arith.constant 2 : index
    %16 = memref.load %arg2[%c2] : memref<20xf32, #tpu.memory_space<smem>>
    %17 = vector.broadcast %16 : f32 to vector<8x128xf32>
    %18 = arith.mulf %17, %1 : vector<8x128xf32>
    %c3 = arith.constant 3 : index
    %19 = memref.load %arg2[%c3] : memref<20xf32, #tpu.memory_space<smem>>
    %20 = vector.broadcast %19 : f32 to vector<8x128xf32>
    %21 = arith.mulf %20, %3 : vector<8x128xf32>
    %22 = arith.addf %18, %21 : vector<8x128xf32>
    %c1_7 = arith.constant 1 : index
    %23 = memref.load %arg3[%c1_7] : memref<10xf32, #tpu.memory_space<smem>>
    %24 = vector.broadcast %23 : f32 to vector<8x128xf32>
    %25 = arith.addf %22, %24 : vector<8x128xf32>
    %cst_8 = arith.constant 0.000000e+00 : f32
    %26 = vector.broadcast %cst_8 : f32 to vector<8x128xf32>
    %27 = arith.maximumf %25, %26 : vector<8x128xf32>
    %c4 = arith.constant 4 : index
    %28 = memref.load %arg2[%c4] : memref<20xf32, #tpu.memory_space<smem>>
    %29 = vector.broadcast %28 : f32 to vector<8x128xf32>
    %30 = arith.mulf %29, %1 : vector<8x128xf32>
    %c5 = arith.constant 5 : index
    %31 = memref.load %arg2[%c5] : memref<20xf32, #tpu.memory_space<smem>>
    %32 = vector.broadcast %31 : f32 to vector<8x128xf32>
    %33 = arith.mulf %32, %3 : vector<8x128xf32>
    %34 = arith.addf %30, %33 : vector<8x128xf32>
    %c2_9 = arith.constant 2 : index
    %35 = memref.load %arg3[%c2_9] : memref<10xf32, #tpu.memory_space<smem>>
    %36 = vector.broadcast %35 : f32 to vector<8x128xf32>
    %37 = arith.addf %34, %36 : vector<8x128xf32>
    %cst_10 = arith.constant 0.000000e+00 : f32
    %38 = vector.broadcast %cst_10 : f32 to vector<8x128xf32>
    %39 = arith.maximumf %37, %38 : vector<8x128xf32>
    %c6 = arith.constant 6 : index
    %40 = memref.load %arg2[%c6] : memref<20xf32, #tpu.memory_space<smem>>
    %41 = vector.broadcast %40 : f32 to vector<8x128xf32>
    %42 = arith.mulf %41, %1 : vector<8x128xf32>
    %c7 = arith.constant 7 : index
    %43 = memref.load %arg2[%c7] : memref<20xf32, #tpu.memory_space<smem>>
    %44 = vector.broadcast %43 : f32 to vector<8x128xf32>
    %45 = arith.mulf %44, %3 : vector<8x128xf32>
    %46 = arith.addf %42, %45 : vector<8x128xf32>
    %c3_11 = arith.constant 3 : index
    %47 = memref.load %arg3[%c3_11] : memref<10xf32, #tpu.memory_space<smem>>
    %48 = vector.broadcast %47 : f32 to vector<8x128xf32>
    %49 = arith.addf %46, %48 : vector<8x128xf32>
    %cst_12 = arith.constant 0.000000e+00 : f32
    %50 = vector.broadcast %cst_12 : f32 to vector<8x128xf32>
    %51 = arith.maximumf %49, %50 : vector<8x128xf32>
    %c8 = arith.constant 8 : index
    %52 = memref.load %arg2[%c8] : memref<20xf32, #tpu.memory_space<smem>>
    %53 = vector.broadcast %52 : f32 to vector<8x128xf32>
    %54 = arith.mulf %53, %1 : vector<8x128xf32>
    %c9 = arith.constant 9 : index
    %55 = memref.load %arg2[%c9] : memref<20xf32, #tpu.memory_space<smem>>
    %56 = vector.broadcast %55 : f32 to vector<8x128xf32>
    %57 = arith.mulf %56, %3 : vector<8x128xf32>
    %58 = arith.addf %54, %57 : vector<8x128xf32>
    %c4_13 = arith.constant 4 : index
    %59 = memref.load %arg3[%c4_13] : memref<10xf32, #tpu.memory_space<smem>>
    %60 = vector.broadcast %59 : f32 to vector<8x128xf32>
    %61 = arith.addf %58, %60 : vector<8x128xf32>
    %cst_14 = arith.constant 0.000000e+00 : f32
    %62 = vector.broadcast %cst_14 : f32 to vector<8x128xf32>
    %63 = arith.maximumf %61, %62 : vector<8x128xf32>
    %c10 = arith.constant 10 : index
    %64 = memref.load %arg2[%c10] : memref<20xf32, #tpu.memory_space<smem>>
    %65 = vector.broadcast %64 : f32 to vector<8x128xf32>
    %66 = arith.mulf %65, %1 : vector<8x128xf32>
    %c11 = arith.constant 11 : index
    %67 = memref.load %arg2[%c11] : memref<20xf32, #tpu.memory_space<smem>>
    %68 = vector.broadcast %67 : f32 to vector<8x128xf32>
    %69 = arith.mulf %68, %3 : vector<8x128xf32>
    %70 = arith.addf %66, %69 : vector<8x128xf32>
    %c5_15 = arith.constant 5 : index
    %71 = memref.load %arg3[%c5_15] : memref<10xf32, #tpu.memory_space<smem>>
    %72 = vector.broadcast %71 : f32 to vector<8x128xf32>
    %73 = arith.addf %70, %72 : vector<8x128xf32>
    %cst_16 = arith.constant 0.000000e+00 : f32
    %74 = vector.broadcast %cst_16 : f32 to vector<8x128xf32>
    %75 = arith.maximumf %73, %74 : vector<8x128xf32>
    %c12 = arith.constant 12 : index
    %76 = memref.load %arg2[%c12] : memref<20xf32, #tpu.memory_space<smem>>
    %77 = vector.broadcast %76 : f32 to vector<8x128xf32>
    %78 = arith.mulf %77, %1 : vector<8x128xf32>
    %c13 = arith.constant 13 : index
    %79 = memref.load %arg2[%c13] : memref<20xf32, #tpu.memory_space<smem>>
    %80 = vector.broadcast %79 : f32 to vector<8x128xf32>
    %81 = arith.mulf %80, %3 : vector<8x128xf32>
    %82 = arith.addf %78, %81 : vector<8x128xf32>
    %c6_17 = arith.constant 6 : index
    %83 = memref.load %arg3[%c6_17] : memref<10xf32, #tpu.memory_space<smem>>
    %84 = vector.broadcast %83 : f32 to vector<8x128xf32>
    %85 = arith.addf %82, %84 : vector<8x128xf32>
    %cst_18 = arith.constant 0.000000e+00 : f32
    %86 = vector.broadcast %cst_18 : f32 to vector<8x128xf32>
    %87 = arith.maximumf %85, %86 : vector<8x128xf32>
    %c14 = arith.constant 14 : index
    %88 = memref.load %arg2[%c14] : memref<20xf32, #tpu.memory_space<smem>>
    %89 = vector.broadcast %88 : f32 to vector<8x128xf32>
    %90 = arith.mulf %89, %1 : vector<8x128xf32>
    %c15 = arith.constant 15 : index
    %91 = memref.load %arg2[%c15] : memref<20xf32, #tpu.memory_space<smem>>
    %92 = vector.broadcast %91 : f32 to vector<8x128xf32>
    %93 = arith.mulf %92, %3 : vector<8x128xf32>
    %94 = arith.addf %90, %93 : vector<8x128xf32>
    %c7_19 = arith.constant 7 : index
    %95 = memref.load %arg3[%c7_19] : memref<10xf32, #tpu.memory_space<smem>>
    %96 = vector.broadcast %95 : f32 to vector<8x128xf32>
    %97 = arith.addf %94, %96 : vector<8x128xf32>
    %cst_20 = arith.constant 0.000000e+00 : f32
    %98 = vector.broadcast %cst_20 : f32 to vector<8x128xf32>
    %99 = arith.maximumf %97, %98 : vector<8x128xf32>
    %c16 = arith.constant 16 : index
    %100 = memref.load %arg2[%c16] : memref<20xf32, #tpu.memory_space<smem>>
    %101 = vector.broadcast %100 : f32 to vector<8x128xf32>
    %102 = arith.mulf %101, %1 : vector<8x128xf32>
    %c17 = arith.constant 17 : index
    %103 = memref.load %arg2[%c17] : memref<20xf32, #tpu.memory_space<smem>>
    %104 = vector.broadcast %103 : f32 to vector<8x128xf32>
    %105 = arith.mulf %104, %3 : vector<8x128xf32>
    %106 = arith.addf %102, %105 : vector<8x128xf32>
    %c8_21 = arith.constant 8 : index
    %107 = memref.load %arg3[%c8_21] : memref<10xf32, #tpu.memory_space<smem>>
    %108 = vector.broadcast %107 : f32 to vector<8x128xf32>
    %109 = arith.addf %106, %108 : vector<8x128xf32>
    %cst_22 = arith.constant 0.000000e+00 : f32
    %110 = vector.broadcast %cst_22 : f32 to vector<8x128xf32>
    %111 = arith.maximumf %109, %110 : vector<8x128xf32>
    %c18 = arith.constant 18 : index
    %112 = memref.load %arg2[%c18] : memref<20xf32, #tpu.memory_space<smem>>
    %113 = vector.broadcast %112 : f32 to vector<8x128xf32>
    %114 = arith.mulf %113, %1 : vector<8x128xf32>
    %c19 = arith.constant 19 : index
    %115 = memref.load %arg2[%c19] : memref<20xf32, #tpu.memory_space<smem>>
    %116 = vector.broadcast %115 : f32 to vector<8x128xf32>
    %117 = arith.mulf %116, %3 : vector<8x128xf32>
    %118 = arith.addf %114, %117 : vector<8x128xf32>
    %c9_23 = arith.constant 9 : index
    %119 = memref.load %arg3[%c9_23] : memref<10xf32, #tpu.memory_space<smem>>
    %120 = vector.broadcast %119 : f32 to vector<8x128xf32>
    %121 = arith.addf %118, %120 : vector<8x128xf32>
    %cst_24 = arith.constant 0.000000e+00 : f32
    %122 = vector.broadcast %cst_24 : f32 to vector<8x128xf32>
    %123 = arith.maximumf %121, %122 : vector<8x128xf32>
    %c0_25 = arith.constant 0 : index
    %124 = memref.load %arg5[%c0_25] : memref<10xf32, #tpu.memory_space<smem>>
    %c0_26 = arith.constant 0 : index
    %125 = memref.load %arg4[%c0_26] : memref<100xf32, #tpu.memory_space<smem>>
    %126 = vector.broadcast %125 : f32 to vector<8x128xf32>
    %127 = arith.mulf %126, %15 : vector<8x128xf32>
    %128 = vector.broadcast %124 : f32 to vector<8x128xf32>
    %129 = arith.addf %128, %127 : vector<8x128xf32>
    %c1_27 = arith.constant 1 : index
    %130 = memref.load %arg4[%c1_27] : memref<100xf32, #tpu.memory_space<smem>>
    %131 = vector.broadcast %130 : f32 to vector<8x128xf32>
    %132 = arith.mulf %131, %27 : vector<8x128xf32>
    %133 = arith.addf %129, %132 : vector<8x128xf32>
    %c2_28 = arith.constant 2 : index
    %134 = memref.load %arg4[%c2_28] : memref<100xf32, #tpu.memory_space<smem>>
    %135 = vector.broadcast %134 : f32 to vector<8x128xf32>
    %136 = arith.mulf %135, %39 : vector<8x128xf32>
    %137 = arith.addf %133, %136 : vector<8x128xf32>
    %c3_29 = arith.constant 3 : index
    %138 = memref.load %arg4[%c3_29] : memref<100xf32, #tpu.memory_space<smem>>
    %139 = vector.broadcast %138 : f32 to vector<8x128xf32>
    %140 = arith.mulf %139, %51 : vector<8x128xf32>
    %141 = arith.addf %137, %140 : vector<8x128xf32>
    %c4_30 = arith.constant 4 : index
    %142 = memref.load %arg4[%c4_30] : memref<100xf32, #tpu.memory_space<smem>>
    %143 = vector.broadcast %142 : f32 to vector<8x128xf32>
    %144 = arith.mulf %143, %63 : vector<8x128xf32>
    %145 = arith.addf %141, %144 : vector<8x128xf32>
    %c5_31 = arith.constant 5 : index
    %146 = memref.load %arg4[%c5_31] : memref<100xf32, #tpu.memory_space<smem>>
    %147 = vector.broadcast %146 : f32 to vector<8x128xf32>
    %148 = arith.mulf %147, %75 : vector<8x128xf32>
    %149 = arith.addf %145, %148 : vector<8x128xf32>
    %c6_32 = arith.constant 6 : index
    %150 = memref.load %arg4[%c6_32] : memref<100xf32, #tpu.memory_space<smem>>
    %151 = vector.broadcast %150 : f32 to vector<8x128xf32>
    %152 = arith.mulf %151, %87 : vector<8x128xf32>
    %153 = arith.addf %149, %152 : vector<8x128xf32>
    %c7_33 = arith.constant 7 : index
    %154 = memref.load %arg4[%c7_33] : memref<100xf32, #tpu.memory_space<smem>>
    %155 = vector.broadcast %154 : f32 to vector<8x128xf32>
    %156 = arith.mulf %155, %99 : vector<8x128xf32>
    %157 = arith.addf %153, %156 : vector<8x128xf32>
    %c8_34 = arith.constant 8 : index
    %158 = memref.load %arg4[%c8_34] : memref<100xf32, #tpu.memory_space<smem>>
    %159 = vector.broadcast %158 : f32 to vector<8x128xf32>
    %160 = arith.mulf %159, %111 : vector<8x128xf32>
    %161 = arith.addf %157, %160 : vector<8x128xf32>
    %c9_35 = arith.constant 9 : index
    %162 = memref.load %arg4[%c9_35] : memref<100xf32, #tpu.memory_space<smem>>
    %163 = vector.broadcast %162 : f32 to vector<8x128xf32>
    %164 = arith.mulf %163, %123 : vector<8x128xf32>
    %165 = arith.addf %161, %164 : vector<8x128xf32>
    %cst_36 = arith.constant 0.000000e+00 : f32
    %166 = vector.broadcast %cst_36 : f32 to vector<8x128xf32>
    %167 = arith.maximumf %165, %166 : vector<8x128xf32>
    %c1_37 = arith.constant 1 : index
    %168 = memref.load %arg5[%c1_37] : memref<10xf32, #tpu.memory_space<smem>>
    %c10_38 = arith.constant 10 : index
    %169 = memref.load %arg4[%c10_38] : memref<100xf32, #tpu.memory_space<smem>>
    %170 = vector.broadcast %169 : f32 to vector<8x128xf32>
    %171 = arith.mulf %170, %15 : vector<8x128xf32>
    %172 = vector.broadcast %168 : f32 to vector<8x128xf32>
    %173 = arith.addf %172, %171 : vector<8x128xf32>
    %c11_39 = arith.constant 11 : index
    %174 = memref.load %arg4[%c11_39] : memref<100xf32, #tpu.memory_space<smem>>
    %175 = vector.broadcast %174 : f32 to vector<8x128xf32>
    %176 = arith.mulf %175, %27 : vector<8x128xf32>
    %177 = arith.addf %173, %176 : vector<8x128xf32>
    %c12_40 = arith.constant 12 : index
    %178 = memref.load %arg4[%c12_40] : memref<100xf32, #tpu.memory_space<smem>>
    %179 = vector.broadcast %178 : f32 to vector<8x128xf32>
    %180 = arith.mulf %179, %39 : vector<8x128xf32>
    %181 = arith.addf %177, %180 : vector<8x128xf32>
    %c13_41 = arith.constant 13 : index
    %182 = memref.load %arg4[%c13_41] : memref<100xf32, #tpu.memory_space<smem>>
    %183 = vector.broadcast %182 : f32 to vector<8x128xf32>
    %184 = arith.mulf %183, %51 : vector<8x128xf32>
    %185 = arith.addf %181, %184 : vector<8x128xf32>
    %c14_42 = arith.constant 14 : index
    %186 = memref.load %arg4[%c14_42] : memref<100xf32, #tpu.memory_space<smem>>
    %187 = vector.broadcast %186 : f32 to vector<8x128xf32>
    %188 = arith.mulf %187, %63 : vector<8x128xf32>
    %189 = arith.addf %185, %188 : vector<8x128xf32>
    %c15_43 = arith.constant 15 : index
    %190 = memref.load %arg4[%c15_43] : memref<100xf32, #tpu.memory_space<smem>>
    %191 = vector.broadcast %190 : f32 to vector<8x128xf32>
    %192 = arith.mulf %191, %75 : vector<8x128xf32>
    %193 = arith.addf %189, %192 : vector<8x128xf32>
    %c16_44 = arith.constant 16 : index
    %194 = memref.load %arg4[%c16_44] : memref<100xf32, #tpu.memory_space<smem>>
    %195 = vector.broadcast %194 : f32 to vector<8x128xf32>
    %196 = arith.mulf %195, %87 : vector<8x128xf32>
    %197 = arith.addf %193, %196 : vector<8x128xf32>
    %c17_45 = arith.constant 17 : index
    %198 = memref.load %arg4[%c17_45] : memref<100xf32, #tpu.memory_space<smem>>
    %199 = vector.broadcast %198 : f32 to vector<8x128xf32>
    %200 = arith.mulf %199, %99 : vector<8x128xf32>
    %201 = arith.addf %197, %200 : vector<8x128xf32>
    %c18_46 = arith.constant 18 : index
    %202 = memref.load %arg4[%c18_46] : memref<100xf32, #tpu.memory_space<smem>>
    %203 = vector.broadcast %202 : f32 to vector<8x128xf32>
    %204 = arith.mulf %203, %111 : vector<8x128xf32>
    %205 = arith.addf %201, %204 : vector<8x128xf32>
    %c19_47 = arith.constant 19 : index
    %206 = memref.load %arg4[%c19_47] : memref<100xf32, #tpu.memory_space<smem>>
    %207 = vector.broadcast %206 : f32 to vector<8x128xf32>
    %208 = arith.mulf %207, %123 : vector<8x128xf32>
    %209 = arith.addf %205, %208 : vector<8x128xf32>
    %cst_48 = arith.constant 0.000000e+00 : f32
    %210 = vector.broadcast %cst_48 : f32 to vector<8x128xf32>
    %211 = arith.maximumf %209, %210 : vector<8x128xf32>
    %c2_49 = arith.constant 2 : index
    %212 = memref.load %arg5[%c2_49] : memref<10xf32, #tpu.memory_space<smem>>
    %c20 = arith.constant 20 : index
    %213 = memref.load %arg4[%c20] : memref<100xf32, #tpu.memory_space<smem>>
    %214 = vector.broadcast %213 : f32 to vector<8x128xf32>
    %215 = arith.mulf %214, %15 : vector<8x128xf32>
    %216 = vector.broadcast %212 : f32 to vector<8x128xf32>
    %217 = arith.addf %216, %215 : vector<8x128xf32>
    %c21 = arith.constant 21 : index
    %218 = memref.load %arg4[%c21] : memref<100xf32, #tpu.memory_space<smem>>
    %219 = vector.broadcast %218 : f32 to vector<8x128xf32>
    %220 = arith.mulf %219, %27 : vector<8x128xf32>
    %221 = arith.addf %217, %220 : vector<8x128xf32>
    %c22 = arith.constant 22 : index
    %222 = memref.load %arg4[%c22] : memref<100xf32, #tpu.memory_space<smem>>
    %223 = vector.broadcast %222 : f32 to vector<8x128xf32>
    %224 = arith.mulf %223, %39 : vector<8x128xf32>
    %225 = arith.addf %221, %224 : vector<8x128xf32>
    %c23 = arith.constant 23 : index
    %226 = memref.load %arg4[%c23] : memref<100xf32, #tpu.memory_space<smem>>
    %227 = vector.broadcast %226 : f32 to vector<8x128xf32>
    %228 = arith.mulf %227, %51 : vector<8x128xf32>
    %229 = arith.addf %225, %228 : vector<8x128xf32>
    %c24 = arith.constant 24 : index
    %230 = memref.load %arg4[%c24] : memref<100xf32, #tpu.memory_space<smem>>
    %231 = vector.broadcast %230 : f32 to vector<8x128xf32>
    %232 = arith.mulf %231, %63 : vector<8x128xf32>
    %233 = arith.addf %229, %232 : vector<8x128xf32>
    %c25 = arith.constant 25 : index
    %234 = memref.load %arg4[%c25] : memref<100xf32, #tpu.memory_space<smem>>
    %235 = vector.broadcast %234 : f32 to vector<8x128xf32>
    %236 = arith.mulf %235, %75 : vector<8x128xf32>
    %237 = arith.addf %233, %236 : vector<8x128xf32>
    %c26 = arith.constant 26 : index
    %238 = memref.load %arg4[%c26] : memref<100xf32, #tpu.memory_space<smem>>
    %239 = vector.broadcast %238 : f32 to vector<8x128xf32>
    %240 = arith.mulf %239, %87 : vector<8x128xf32>
    %241 = arith.addf %237, %240 : vector<8x128xf32>
    %c27 = arith.constant 27 : index
    %242 = memref.load %arg4[%c27] : memref<100xf32, #tpu.memory_space<smem>>
    %243 = vector.broadcast %242 : f32 to vector<8x128xf32>
    %244 = arith.mulf %243, %99 : vector<8x128xf32>
    %245 = arith.addf %241, %244 : vector<8x128xf32>
    %c28 = arith.constant 28 : index
    %246 = memref.load %arg4[%c28] : memref<100xf32, #tpu.memory_space<smem>>
    %247 = vector.broadcast %246 : f32 to vector<8x128xf32>
    %248 = arith.mulf %247, %111 : vector<8x128xf32>
    %249 = arith.addf %245, %248 : vector<8x128xf32>
    %c29 = arith.constant 29 : index
    %250 = memref.load %arg4[%c29] : memref<100xf32, #tpu.memory_space<smem>>
    %251 = vector.broadcast %250 : f32 to vector<8x128xf32>
    %252 = arith.mulf %251, %123 : vector<8x128xf32>
    %253 = arith.addf %249, %252 : vector<8x128xf32>
    %cst_50 = arith.constant 0.000000e+00 : f32
    %254 = vector.broadcast %cst_50 : f32 to vector<8x128xf32>
    %255 = arith.maximumf %253, %254 : vector<8x128xf32>
    %c3_51 = arith.constant 3 : index
    %256 = memref.load %arg5[%c3_51] : memref<10xf32, #tpu.memory_space<smem>>
    %c30 = arith.constant 30 : index
    %257 = memref.load %arg4[%c30] : memref<100xf32, #tpu.memory_space<smem>>
    %258 = vector.broadcast %257 : f32 to vector<8x128xf32>
    %259 = arith.mulf %258, %15 : vector<8x128xf32>
    %260 = vector.broadcast %256 : f32 to vector<8x128xf32>
    %261 = arith.addf %260, %259 : vector<8x128xf32>
    %c31 = arith.constant 31 : index
    %262 = memref.load %arg4[%c31] : memref<100xf32, #tpu.memory_space<smem>>
    %263 = vector.broadcast %262 : f32 to vector<8x128xf32>
    %264 = arith.mulf %263, %27 : vector<8x128xf32>
    %265 = arith.addf %261, %264 : vector<8x128xf32>
    %c32 = arith.constant 32 : index
    %266 = memref.load %arg4[%c32] : memref<100xf32, #tpu.memory_space<smem>>
    %267 = vector.broadcast %266 : f32 to vector<8x128xf32>
    %268 = arith.mulf %267, %39 : vector<8x128xf32>
    %269 = arith.addf %265, %268 : vector<8x128xf32>
    %c33 = arith.constant 33 : index
    %270 = memref.load %arg4[%c33] : memref<100xf32, #tpu.memory_space<smem>>
    %271 = vector.broadcast %270 : f32 to vector<8x128xf32>
    %272 = arith.mulf %271, %51 : vector<8x128xf32>
    %273 = arith.addf %269, %272 : vector<8x128xf32>
    %c34 = arith.constant 34 : index
    %274 = memref.load %arg4[%c34] : memref<100xf32, #tpu.memory_space<smem>>
    %275 = vector.broadcast %274 : f32 to vector<8x128xf32>
    %276 = arith.mulf %275, %63 : vector<8x128xf32>
    %277 = arith.addf %273, %276 : vector<8x128xf32>
    %c35 = arith.constant 35 : index
    %278 = memref.load %arg4[%c35] : memref<100xf32, #tpu.memory_space<smem>>
    %279 = vector.broadcast %278 : f32 to vector<8x128xf32>
    %280 = arith.mulf %279, %75 : vector<8x128xf32>
    %281 = arith.addf %277, %280 : vector<8x128xf32>
    %c36 = arith.constant 36 : index
    %282 = memref.load %arg4[%c36] : memref<100xf32, #tpu.memory_space<smem>>
    %283 = vector.broadcast %282 : f32 to vector<8x128xf32>
    %284 = arith.mulf %283, %87 : vector<8x128xf32>
    %285 = arith.addf %281, %284 : vector<8x128xf32>
    %c37 = arith.constant 37 : index
    %286 = memref.load %arg4[%c37] : memref<100xf32, #tpu.memory_space<smem>>
    %287 = vector.broadcast %286 : f32 to vector<8x128xf32>
    %288 = arith.mulf %287, %99 : vector<8x128xf32>
    %289 = arith.addf %285, %288 : vector<8x128xf32>
    %c38 = arith.constant 38 : index
    %290 = memref.load %arg4[%c38] : memref<100xf32, #tpu.memory_space<smem>>
    %291 = vector.broadcast %290 : f32 to vector<8x128xf32>
    %292 = arith.mulf %291, %111 : vector<8x128xf32>
    %293 = arith.addf %289, %292 : vector<8x128xf32>
    %c39 = arith.constant 39 : index
    %294 = memref.load %arg4[%c39] : memref<100xf32, #tpu.memory_space<smem>>
    %295 = vector.broadcast %294 : f32 to vector<8x128xf32>
    %296 = arith.mulf %295, %123 : vector<8x128xf32>
    %297 = arith.addf %293, %296 : vector<8x128xf32>
    %cst_52 = arith.constant 0.000000e+00 : f32
    %298 = vector.broadcast %cst_52 : f32 to vector<8x128xf32>
    %299 = arith.maximumf %297, %298 : vector<8x128xf32>
    %c4_53 = arith.constant 4 : index
    %300 = memref.load %arg5[%c4_53] : memref<10xf32, #tpu.memory_space<smem>>
    %c40 = arith.constant 40 : index
    %301 = memref.load %arg4[%c40] : memref<100xf32, #tpu.memory_space<smem>>
    %302 = vector.broadcast %301 : f32 to vector<8x128xf32>
    %303 = arith.mulf %302, %15 : vector<8x128xf32>
    %304 = vector.broadcast %300 : f32 to vector<8x128xf32>
    %305 = arith.addf %304, %303 : vector<8x128xf32>
    %c41 = arith.constant 41 : index
    %306 = memref.load %arg4[%c41] : memref<100xf32, #tpu.memory_space<smem>>
    %307 = vector.broadcast %306 : f32 to vector<8x128xf32>
    %308 = arith.mulf %307, %27 : vector<8x128xf32>
    %309 = arith.addf %305, %308 : vector<8x128xf32>
    %c42 = arith.constant 42 : index
    %310 = memref.load %arg4[%c42] : memref<100xf32, #tpu.memory_space<smem>>
    %311 = vector.broadcast %310 : f32 to vector<8x128xf32>
    %312 = arith.mulf %311, %39 : vector<8x128xf32>
    %313 = arith.addf %309, %312 : vector<8x128xf32>
    %c43 = arith.constant 43 : index
    %314 = memref.load %arg4[%c43] : memref<100xf32, #tpu.memory_space<smem>>
    %315 = vector.broadcast %314 : f32 to vector<8x128xf32>
    %316 = arith.mulf %315, %51 : vector<8x128xf32>
    %317 = arith.addf %313, %316 : vector<8x128xf32>
    %c44 = arith.constant 44 : index
    %318 = memref.load %arg4[%c44] : memref<100xf32, #tpu.memory_space<smem>>
    %319 = vector.broadcast %318 : f32 to vector<8x128xf32>
    %320 = arith.mulf %319, %63 : vector<8x128xf32>
    %321 = arith.addf %317, %320 : vector<8x128xf32>
    %c45 = arith.constant 45 : index
    %322 = memref.load %arg4[%c45] : memref<100xf32, #tpu.memory_space<smem>>
    %323 = vector.broadcast %322 : f32 to vector<8x128xf32>
    %324 = arith.mulf %323, %75 : vector<8x128xf32>
    %325 = arith.addf %321, %324 : vector<8x128xf32>
    %c46 = arith.constant 46 : index
    %326 = memref.load %arg4[%c46] : memref<100xf32, #tpu.memory_space<smem>>
    %327 = vector.broadcast %326 : f32 to vector<8x128xf32>
    %328 = arith.mulf %327, %87 : vector<8x128xf32>
    %329 = arith.addf %325, %328 : vector<8x128xf32>
    %c47 = arith.constant 47 : index
    %330 = memref.load %arg4[%c47] : memref<100xf32, #tpu.memory_space<smem>>
    %331 = vector.broadcast %330 : f32 to vector<8x128xf32>
    %332 = arith.mulf %331, %99 : vector<8x128xf32>
    %333 = arith.addf %329, %332 : vector<8x128xf32>
    %c48 = arith.constant 48 : index
    %334 = memref.load %arg4[%c48] : memref<100xf32, #tpu.memory_space<smem>>
    %335 = vector.broadcast %334 : f32 to vector<8x128xf32>
    %336 = arith.mulf %335, %111 : vector<8x128xf32>
    %337 = arith.addf %333, %336 : vector<8x128xf32>
    %c49 = arith.constant 49 : index
    %338 = memref.load %arg4[%c49] : memref<100xf32, #tpu.memory_space<smem>>
    %339 = vector.broadcast %338 : f32 to vector<8x128xf32>
    %340 = arith.mulf %339, %123 : vector<8x128xf32>
    %341 = arith.addf %337, %340 : vector<8x128xf32>
    %cst_54 = arith.constant 0.000000e+00 : f32
    %342 = vector.broadcast %cst_54 : f32 to vector<8x128xf32>
    %343 = arith.maximumf %341, %342 : vector<8x128xf32>
    %c5_55 = arith.constant 5 : index
    %344 = memref.load %arg5[%c5_55] : memref<10xf32, #tpu.memory_space<smem>>
    %c50 = arith.constant 50 : index
    %345 = memref.load %arg4[%c50] : memref<100xf32, #tpu.memory_space<smem>>
    %346 = vector.broadcast %345 : f32 to vector<8x128xf32>
    %347 = arith.mulf %346, %15 : vector<8x128xf32>
    %348 = vector.broadcast %344 : f32 to vector<8x128xf32>
    %349 = arith.addf %348, %347 : vector<8x128xf32>
    %c51 = arith.constant 51 : index
    %350 = memref.load %arg4[%c51] : memref<100xf32, #tpu.memory_space<smem>>
    %351 = vector.broadcast %350 : f32 to vector<8x128xf32>
    %352 = arith.mulf %351, %27 : vector<8x128xf32>
    %353 = arith.addf %349, %352 : vector<8x128xf32>
    %c52 = arith.constant 52 : index
    %354 = memref.load %arg4[%c52] : memref<100xf32, #tpu.memory_space<smem>>
    %355 = vector.broadcast %354 : f32 to vector<8x128xf32>
    %356 = arith.mulf %355, %39 : vector<8x128xf32>
    %357 = arith.addf %353, %356 : vector<8x128xf32>
    %c53 = arith.constant 53 : index
    %358 = memref.load %arg4[%c53] : memref<100xf32, #tpu.memory_space<smem>>
    %359 = vector.broadcast %358 : f32 to vector<8x128xf32>
    %360 = arith.mulf %359, %51 : vector<8x128xf32>
    %361 = arith.addf %357, %360 : vector<8x128xf32>
    %c54 = arith.constant 54 : index
    %362 = memref.load %arg4[%c54] : memref<100xf32, #tpu.memory_space<smem>>
    %363 = vector.broadcast %362 : f32 to vector<8x128xf32>
    %364 = arith.mulf %363, %63 : vector<8x128xf32>
    %365 = arith.addf %361, %364 : vector<8x128xf32>
    %c55 = arith.constant 55 : index
    %366 = memref.load %arg4[%c55] : memref<100xf32, #tpu.memory_space<smem>>
    %367 = vector.broadcast %366 : f32 to vector<8x128xf32>
    %368 = arith.mulf %367, %75 : vector<8x128xf32>
    %369 = arith.addf %365, %368 : vector<8x128xf32>
    %c56 = arith.constant 56 : index
    %370 = memref.load %arg4[%c56] : memref<100xf32, #tpu.memory_space<smem>>
    %371 = vector.broadcast %370 : f32 to vector<8x128xf32>
    %372 = arith.mulf %371, %87 : vector<8x128xf32>
    %373 = arith.addf %369, %372 : vector<8x128xf32>
    %c57 = arith.constant 57 : index
    %374 = memref.load %arg4[%c57] : memref<100xf32, #tpu.memory_space<smem>>
    %375 = vector.broadcast %374 : f32 to vector<8x128xf32>
    %376 = arith.mulf %375, %99 : vector<8x128xf32>
    %377 = arith.addf %373, %376 : vector<8x128xf32>
    %c58 = arith.constant 58 : index
    %378 = memref.load %arg4[%c58] : memref<100xf32, #tpu.memory_space<smem>>
    %379 = vector.broadcast %378 : f32 to vector<8x128xf32>
    %380 = arith.mulf %379, %111 : vector<8x128xf32>
    %381 = arith.addf %377, %380 : vector<8x128xf32>
    %c59 = arith.constant 59 : index
    %382 = memref.load %arg4[%c59] : memref<100xf32, #tpu.memory_space<smem>>
    %383 = vector.broadcast %382 : f32 to vector<8x128xf32>
    %384 = arith.mulf %383, %123 : vector<8x128xf32>
    %385 = arith.addf %381, %384 : vector<8x128xf32>
    %cst_56 = arith.constant 0.000000e+00 : f32
    %386 = vector.broadcast %cst_56 : f32 to vector<8x128xf32>
    %387 = arith.maximumf %385, %386 : vector<8x128xf32>
    %c6_57 = arith.constant 6 : index
    %388 = memref.load %arg5[%c6_57] : memref<10xf32, #tpu.memory_space<smem>>
    %c60 = arith.constant 60 : index
    %389 = memref.load %arg4[%c60] : memref<100xf32, #tpu.memory_space<smem>>
    %390 = vector.broadcast %389 : f32 to vector<8x128xf32>
    %391 = arith.mulf %390, %15 : vector<8x128xf32>
    %392 = vector.broadcast %388 : f32 to vector<8x128xf32>
    %393 = arith.addf %392, %391 : vector<8x128xf32>
    %c61 = arith.constant 61 : index
    %394 = memref.load %arg4[%c61] : memref<100xf32, #tpu.memory_space<smem>>
    %395 = vector.broadcast %394 : f32 to vector<8x128xf32>
    %396 = arith.mulf %395, %27 : vector<8x128xf32>
    %397 = arith.addf %393, %396 : vector<8x128xf32>
    %c62 = arith.constant 62 : index
    %398 = memref.load %arg4[%c62] : memref<100xf32, #tpu.memory_space<smem>>
    %399 = vector.broadcast %398 : f32 to vector<8x128xf32>
    %400 = arith.mulf %399, %39 : vector<8x128xf32>
    %401 = arith.addf %397, %400 : vector<8x128xf32>
    %c63 = arith.constant 63 : index
    %402 = memref.load %arg4[%c63] : memref<100xf32, #tpu.memory_space<smem>>
    %403 = vector.broadcast %402 : f32 to vector<8x128xf32>
    %404 = arith.mulf %403, %51 : vector<8x128xf32>
    %405 = arith.addf %401, %404 : vector<8x128xf32>
    %c64 = arith.constant 64 : index
    %406 = memref.load %arg4[%c64] : memref<100xf32, #tpu.memory_space<smem>>
    %407 = vector.broadcast %406 : f32 to vector<8x128xf32>
    %408 = arith.mulf %407, %63 : vector<8x128xf32>
    %409 = arith.addf %405, %408 : vector<8x128xf32>
    %c65 = arith.constant 65 : index
    %410 = memref.load %arg4[%c65] : memref<100xf32, #tpu.memory_space<smem>>
    %411 = vector.broadcast %410 : f32 to vector<8x128xf32>
    %412 = arith.mulf %411, %75 : vector<8x128xf32>
    %413 = arith.addf %409, %412 : vector<8x128xf32>
    %c66 = arith.constant 66 : index
    %414 = memref.load %arg4[%c66] : memref<100xf32, #tpu.memory_space<smem>>
    %415 = vector.broadcast %414 : f32 to vector<8x128xf32>
    %416 = arith.mulf %415, %87 : vector<8x128xf32>
    %417 = arith.addf %413, %416 : vector<8x128xf32>
    %c67 = arith.constant 67 : index
    %418 = memref.load %arg4[%c67] : memref<100xf32, #tpu.memory_space<smem>>
    %419 = vector.broadcast %418 : f32 to vector<8x128xf32>
    %420 = arith.mulf %419, %99 : vector<8x128xf32>
    %421 = arith.addf %417, %420 : vector<8x128xf32>
    %c68 = arith.constant 68 : index
    %422 = memref.load %arg4[%c68] : memref<100xf32, #tpu.memory_space<smem>>
    %423 = vector.broadcast %422 : f32 to vector<8x128xf32>
    %424 = arith.mulf %423, %111 : vector<8x128xf32>
    %425 = arith.addf %421, %424 : vector<8x128xf32>
    %c69 = arith.constant 69 : index
    %426 = memref.load %arg4[%c69] : memref<100xf32, #tpu.memory_space<smem>>
    %427 = vector.broadcast %426 : f32 to vector<8x128xf32>
    %428 = arith.mulf %427, %123 : vector<8x128xf32>
    %429 = arith.addf %425, %428 : vector<8x128xf32>
    %cst_58 = arith.constant 0.000000e+00 : f32
    %430 = vector.broadcast %cst_58 : f32 to vector<8x128xf32>
    %431 = arith.maximumf %429, %430 : vector<8x128xf32>
    %c7_59 = arith.constant 7 : index
    %432 = memref.load %arg5[%c7_59] : memref<10xf32, #tpu.memory_space<smem>>
    %c70 = arith.constant 70 : index
    %433 = memref.load %arg4[%c70] : memref<100xf32, #tpu.memory_space<smem>>
    %434 = vector.broadcast %433 : f32 to vector<8x128xf32>
    %435 = arith.mulf %434, %15 : vector<8x128xf32>
    %436 = vector.broadcast %432 : f32 to vector<8x128xf32>
    %437 = arith.addf %436, %435 : vector<8x128xf32>
    %c71 = arith.constant 71 : index
    %438 = memref.load %arg4[%c71] : memref<100xf32, #tpu.memory_space<smem>>
    %439 = vector.broadcast %438 : f32 to vector<8x128xf32>
    %440 = arith.mulf %439, %27 : vector<8x128xf32>
    %441 = arith.addf %437, %440 : vector<8x128xf32>
    %c72 = arith.constant 72 : index
    %442 = memref.load %arg4[%c72] : memref<100xf32, #tpu.memory_space<smem>>
    %443 = vector.broadcast %442 : f32 to vector<8x128xf32>
    %444 = arith.mulf %443, %39 : vector<8x128xf32>
    %445 = arith.addf %441, %444 : vector<8x128xf32>
    %c73 = arith.constant 73 : index
    %446 = memref.load %arg4[%c73] : memref<100xf32, #tpu.memory_space<smem>>
    %447 = vector.broadcast %446 : f32 to vector<8x128xf32>
    %448 = arith.mulf %447, %51 : vector<8x128xf32>
    %449 = arith.addf %445, %448 : vector<8x128xf32>
    %c74 = arith.constant 74 : index
    %450 = memref.load %arg4[%c74] : memref<100xf32, #tpu.memory_space<smem>>
    %451 = vector.broadcast %450 : f32 to vector<8x128xf32>
    %452 = arith.mulf %451, %63 : vector<8x128xf32>
    %453 = arith.addf %449, %452 : vector<8x128xf32>
    %c75 = arith.constant 75 : index
    %454 = memref.load %arg4[%c75] : memref<100xf32, #tpu.memory_space<smem>>
    %455 = vector.broadcast %454 : f32 to vector<8x128xf32>
    %456 = arith.mulf %455, %75 : vector<8x128xf32>
    %457 = arith.addf %453, %456 : vector<8x128xf32>
    %c76 = arith.constant 76 : index
    %458 = memref.load %arg4[%c76] : memref<100xf32, #tpu.memory_space<smem>>
    %459 = vector.broadcast %458 : f32 to vector<8x128xf32>
    %460 = arith.mulf %459, %87 : vector<8x128xf32>
    %461 = arith.addf %457, %460 : vector<8x128xf32>
    %c77 = arith.constant 77 : index
    %462 = memref.load %arg4[%c77] : memref<100xf32, #tpu.memory_space<smem>>
    %463 = vector.broadcast %462 : f32 to vector<8x128xf32>
    %464 = arith.mulf %463, %99 : vector<8x128xf32>
    %465 = arith.addf %461, %464 : vector<8x128xf32>
    %c78 = arith.constant 78 : index
    %466 = memref.load %arg4[%c78] : memref<100xf32, #tpu.memory_space<smem>>
    %467 = vector.broadcast %466 : f32 to vector<8x128xf32>
    %468 = arith.mulf %467, %111 : vector<8x128xf32>
    %469 = arith.addf %465, %468 : vector<8x128xf32>
    %c79 = arith.constant 79 : index
    %470 = memref.load %arg4[%c79] : memref<100xf32, #tpu.memory_space<smem>>
    %471 = vector.broadcast %470 : f32 to vector<8x128xf32>
    %472 = arith.mulf %471, %123 : vector<8x128xf32>
    %473 = arith.addf %469, %472 : vector<8x128xf32>
    %cst_60 = arith.constant 0.000000e+00 : f32
    %474 = vector.broadcast %cst_60 : f32 to vector<8x128xf32>
    %475 = arith.maximumf %473, %474 : vector<8x128xf32>
    %c8_61 = arith.constant 8 : index
    %476 = memref.load %arg5[%c8_61] : memref<10xf32, #tpu.memory_space<smem>>
    %c80 = arith.constant 80 : index
    %477 = memref.load %arg4[%c80] : memref<100xf32, #tpu.memory_space<smem>>
    %478 = vector.broadcast %477 : f32 to vector<8x128xf32>
    %479 = arith.mulf %478, %15 : vector<8x128xf32>
    %480 = vector.broadcast %476 : f32 to vector<8x128xf32>
    %481 = arith.addf %480, %479 : vector<8x128xf32>
    %c81 = arith.constant 81 : index
    %482 = memref.load %arg4[%c81] : memref<100xf32, #tpu.memory_space<smem>>
    %483 = vector.broadcast %482 : f32 to vector<8x128xf32>
    %484 = arith.mulf %483, %27 : vector<8x128xf32>
    %485 = arith.addf %481, %484 : vector<8x128xf32>
    %c82 = arith.constant 82 : index
    %486 = memref.load %arg4[%c82] : memref<100xf32, #tpu.memory_space<smem>>
    %487 = vector.broadcast %486 : f32 to vector<8x128xf32>
    %488 = arith.mulf %487, %39 : vector<8x128xf32>
    %489 = arith.addf %485, %488 : vector<8x128xf32>
    %c83 = arith.constant 83 : index
    %490 = memref.load %arg4[%c83] : memref<100xf32, #tpu.memory_space<smem>>
    %491 = vector.broadcast %490 : f32 to vector<8x128xf32>
    %492 = arith.mulf %491, %51 : vector<8x128xf32>
    %493 = arith.addf %489, %492 : vector<8x128xf32>
    %c84 = arith.constant 84 : index
    %494 = memref.load %arg4[%c84] : memref<100xf32, #tpu.memory_space<smem>>
    %495 = vector.broadcast %494 : f32 to vector<8x128xf32>
    %496 = arith.mulf %495, %63 : vector<8x128xf32>
    %497 = arith.addf %493, %496 : vector<8x128xf32>
    %c85 = arith.constant 85 : index
    %498 = memref.load %arg4[%c85] : memref<100xf32, #tpu.memory_space<smem>>
    %499 = vector.broadcast %498 : f32 to vector<8x128xf32>
    %500 = arith.mulf %499, %75 : vector<8x128xf32>
    %501 = arith.addf %497, %500 : vector<8x128xf32>
    %c86 = arith.constant 86 : index
    %502 = memref.load %arg4[%c86] : memref<100xf32, #tpu.memory_space<smem>>
    %503 = vector.broadcast %502 : f32 to vector<8x128xf32>
    %504 = arith.mulf %503, %87 : vector<8x128xf32>
    %505 = arith.addf %501, %504 : vector<8x128xf32>
    %c87 = arith.constant 87 : index
    %506 = memref.load %arg4[%c87] : memref<100xf32, #tpu.memory_space<smem>>
    %507 = vector.broadcast %506 : f32 to vector<8x128xf32>
    %508 = arith.mulf %507, %99 : vector<8x128xf32>
    %509 = arith.addf %505, %508 : vector<8x128xf32>
    %c88 = arith.constant 88 : index
    %510 = memref.load %arg4[%c88] : memref<100xf32, #tpu.memory_space<smem>>
    %511 = vector.broadcast %510 : f32 to vector<8x128xf32>
    %512 = arith.mulf %511, %111 : vector<8x128xf32>
    %513 = arith.addf %509, %512 : vector<8x128xf32>
    %c89 = arith.constant 89 : index
    %514 = memref.load %arg4[%c89] : memref<100xf32, #tpu.memory_space<smem>>
    %515 = vector.broadcast %514 : f32 to vector<8x128xf32>
    %516 = arith.mulf %515, %123 : vector<8x128xf32>
    %517 = arith.addf %513, %516 : vector<8x128xf32>
    %cst_62 = arith.constant 0.000000e+00 : f32
    %518 = vector.broadcast %cst_62 : f32 to vector<8x128xf32>
    %519 = arith.maximumf %517, %518 : vector<8x128xf32>
    %c9_63 = arith.constant 9 : index
    %520 = memref.load %arg5[%c9_63] : memref<10xf32, #tpu.memory_space<smem>>
    %c90 = arith.constant 90 : index
    %521 = memref.load %arg4[%c90] : memref<100xf32, #tpu.memory_space<smem>>
    %522 = vector.broadcast %521 : f32 to vector<8x128xf32>
    %523 = arith.mulf %522, %15 : vector<8x128xf32>
    %524 = vector.broadcast %520 : f32 to vector<8x128xf32>
    %525 = arith.addf %524, %523 : vector<8x128xf32>
    %c91 = arith.constant 91 : index
    %526 = memref.load %arg4[%c91] : memref<100xf32, #tpu.memory_space<smem>>
    %527 = vector.broadcast %526 : f32 to vector<8x128xf32>
    %528 = arith.mulf %527, %27 : vector<8x128xf32>
    %529 = arith.addf %525, %528 : vector<8x128xf32>
    %c92 = arith.constant 92 : index
    %530 = memref.load %arg4[%c92] : memref<100xf32, #tpu.memory_space<smem>>
    %531 = vector.broadcast %530 : f32 to vector<8x128xf32>
    %532 = arith.mulf %531, %39 : vector<8x128xf32>
    %533 = arith.addf %529, %532 : vector<8x128xf32>
    %c93 = arith.constant 93 : index
    %534 = memref.load %arg4[%c93] : memref<100xf32, #tpu.memory_space<smem>>
    %535 = vector.broadcast %534 : f32 to vector<8x128xf32>
    %536 = arith.mulf %535, %51 : vector<8x128xf32>
    %537 = arith.addf %533, %536 : vector<8x128xf32>
    %c94 = arith.constant 94 : index
    %538 = memref.load %arg4[%c94] : memref<100xf32, #tpu.memory_space<smem>>
    %539 = vector.broadcast %538 : f32 to vector<8x128xf32>
    %540 = arith.mulf %539, %63 : vector<8x128xf32>
    %541 = arith.addf %537, %540 : vector<8x128xf32>
    %c95 = arith.constant 95 : index
    %542 = memref.load %arg4[%c95] : memref<100xf32, #tpu.memory_space<smem>>
    %543 = vector.broadcast %542 : f32 to vector<8x128xf32>
    %544 = arith.mulf %543, %75 : vector<8x128xf32>
    %545 = arith.addf %541, %544 : vector<8x128xf32>
    %c96 = arith.constant 96 : index
    %546 = memref.load %arg4[%c96] : memref<100xf32, #tpu.memory_space<smem>>
    %547 = vector.broadcast %546 : f32 to vector<8x128xf32>
    %548 = arith.mulf %547, %87 : vector<8x128xf32>
    %549 = arith.addf %545, %548 : vector<8x128xf32>
    %c97 = arith.constant 97 : index
    %550 = memref.load %arg4[%c97] : memref<100xf32, #tpu.memory_space<smem>>
    %551 = vector.broadcast %550 : f32 to vector<8x128xf32>
    %552 = arith.mulf %551, %99 : vector<8x128xf32>
    %553 = arith.addf %549, %552 : vector<8x128xf32>
    %c98 = arith.constant 98 : index
    %554 = memref.load %arg4[%c98] : memref<100xf32, #tpu.memory_space<smem>>
    %555 = vector.broadcast %554 : f32 to vector<8x128xf32>
    %556 = arith.mulf %555, %111 : vector<8x128xf32>
    %557 = arith.addf %553, %556 : vector<8x128xf32>
    %c99 = arith.constant 99 : index
    %558 = memref.load %arg4[%c99] : memref<100xf32, #tpu.memory_space<smem>>
    %559 = vector.broadcast %558 : f32 to vector<8x128xf32>
    %560 = arith.mulf %559, %123 : vector<8x128xf32>
    %561 = arith.addf %557, %560 : vector<8x128xf32>
    %cst_64 = arith.constant 0.000000e+00 : f32
    %562 = vector.broadcast %cst_64 : f32 to vector<8x128xf32>
    %563 = arith.maximumf %561, %562 : vector<8x128xf32>
    %c0_65 = arith.constant 0 : index
    %564 = memref.load %arg7[%c0_65] : memref<1xf32, #tpu.memory_space<smem>>
    %c0_66 = arith.constant 0 : index
    %565 = memref.load %arg6[%c0_66] : memref<10xf32, #tpu.memory_space<smem>>
    %566 = vector.broadcast %565 : f32 to vector<8x128xf32>
    %567 = arith.mulf %566, %167 : vector<8x128xf32>
    %568 = vector.broadcast %564 : f32 to vector<8x128xf32>
    %569 = arith.addf %568, %567 : vector<8x128xf32>
    %c1_67 = arith.constant 1 : index
    %570 = memref.load %arg6[%c1_67] : memref<10xf32, #tpu.memory_space<smem>>
    %571 = vector.broadcast %570 : f32 to vector<8x128xf32>
    %572 = arith.mulf %571, %211 : vector<8x128xf32>
    %573 = arith.addf %569, %572 : vector<8x128xf32>
    %c2_68 = arith.constant 2 : index
    %574 = memref.load %arg6[%c2_68] : memref<10xf32, #tpu.memory_space<smem>>
    %575 = vector.broadcast %574 : f32 to vector<8x128xf32>
    %576 = arith.mulf %575, %255 : vector<8x128xf32>
    %577 = arith.addf %573, %576 : vector<8x128xf32>
    %c3_69 = arith.constant 3 : index
    %578 = memref.load %arg6[%c3_69] : memref<10xf32, #tpu.memory_space<smem>>
    %579 = vector.broadcast %578 : f32 to vector<8x128xf32>
    %580 = arith.mulf %579, %299 : vector<8x128xf32>
    %581 = arith.addf %577, %580 : vector<8x128xf32>
    %c4_70 = arith.constant 4 : index
    %582 = memref.load %arg6[%c4_70] : memref<10xf32, #tpu.memory_space<smem>>
    %583 = vector.broadcast %582 : f32 to vector<8x128xf32>
    %584 = arith.mulf %583, %343 : vector<8x128xf32>
    %585 = arith.addf %581, %584 : vector<8x128xf32>
    %c5_71 = arith.constant 5 : index
    %586 = memref.load %arg6[%c5_71] : memref<10xf32, #tpu.memory_space<smem>>
    %587 = vector.broadcast %586 : f32 to vector<8x128xf32>
    %588 = arith.mulf %587, %387 : vector<8x128xf32>
    %589 = arith.addf %585, %588 : vector<8x128xf32>
    %c6_72 = arith.constant 6 : index
    %590 = memref.load %arg6[%c6_72] : memref<10xf32, #tpu.memory_space<smem>>
    %591 = vector.broadcast %590 : f32 to vector<8x128xf32>
    %592 = arith.mulf %591, %431 : vector<8x128xf32>
    %593 = arith.addf %589, %592 : vector<8x128xf32>
    %c7_73 = arith.constant 7 : index
    %594 = memref.load %arg6[%c7_73] : memref<10xf32, #tpu.memory_space<smem>>
    %595 = vector.broadcast %594 : f32 to vector<8x128xf32>
    %596 = arith.mulf %595, %475 : vector<8x128xf32>
    %597 = arith.addf %593, %596 : vector<8x128xf32>
    %c8_74 = arith.constant 8 : index
    %598 = memref.load %arg6[%c8_74] : memref<10xf32, #tpu.memory_space<smem>>
    %599 = vector.broadcast %598 : f32 to vector<8x128xf32>
    %600 = arith.mulf %599, %519 : vector<8x128xf32>
    %601 = arith.addf %597, %600 : vector<8x128xf32>
    %c9_75 = arith.constant 9 : index
    %602 = memref.load %arg6[%c9_75] : memref<10xf32, #tpu.memory_space<smem>>
    %603 = vector.broadcast %602 : f32 to vector<8x128xf32>
    %604 = arith.mulf %603, %563 : vector<8x128xf32>
    %605 = arith.addf %601, %604 : vector<8x128xf32>
    %c0_76 = arith.constant 0 : index
    %c0_77 = arith.constant 0 : index
    %606 = vector.load %arg8[%c0_76, %c0_77] : memref<8x128xf32, #tpu.memory_space<vmem>>, vector<8x128xf32>
    tpu.vector_store %arg8[%c0_76, %c0_77], %605 {strides = array<i32>} : memref<8x128xf32, #tpu.memory_space<vmem>>, vector<8x128xf32>,
    return
  }
  func.func @transform_0(%arg0: i32) -> (i32, i32, i32) {
    %c0_i32 = arith.constant 0 : i32
    %c0_i32_0 = arith.constant 0 : i32
    %c0_i32_1 = arith.constant 0 : i32
    return %c0_i32, %arg0, %c0_i32_0 : i32, i32, i32
  }
  func.func @transform_1(%arg0: i32) -> i32 {
    %c0_i32 = arith.constant 0 : i32
    %c0_i32_0 = arith.constant 0 : i32
    return %c0_i32 : i32
  }
  func.func @transform_2(%arg0: i32) -> i32 {
    %c0_i32 = arith.constant 0 : i32
    %c0_i32_0 = arith.constant 0 : i32
    return %c0_i32 : i32
  }
  func.func @transform_3(%arg0: i32) -> i32 {
    %c0_i32 = arith.constant 0 : i32
    %c0_i32_0 = arith.constant 0 : i32
    return %c0_i32 : i32
  }
  func.func @transform_4(%arg0: i32) -> i32 {
    %c0_i32 = arith.constant 0 : i32
    %c0_i32_0 = arith.constant 0 : i32
    return %c0_i32 : i32
  }
  func.func @transform_5(%arg0: i32) -> i32 {
    %c0_i32 = arith.constant 0 : i32
    %c0_i32_0 = arith.constant 0 : i32
    return %c0_i32 : i32
  }
  func.func @transform_6(%arg0: i32) -> i32 {
    %c0_i32 = arith.constant 0 : i32
    %c0_i32_0 = arith.constant 0 : i32
    return %c0_i32 : i32
  }
  func.func @transform_7(%arg0: i32) -> (i32, i32) {
    %c0_i32 = arith.constant 0 : i32
    %c0_i32_0 = arith.constant 0 : i32
    return %arg0, %c0_i32 : i32, i32
  }
}

</mosaic_0001>

<bundles_post_ra>
// kernel: circle_model_v2.1
= control target key start
LH: loop header
LB: loop body
LE: loop exit
PB: predicated region body
PF: predicated region fallthrough
CT: control target
= control target key end

     0   :  { %s1579_s0 = inlined_call_operand.vmem [shape: f32[2,8,128], index: 0, kind: input, shape index: {}]   ;;  %s1580_s1 = inlined_call_operand.vmem [shape: f32[20], index: 1, kind: input, shape index: {}]   ;;  %s1581_s2 = inlined_call_operand.vmem [shape: f32[10], index: 2, kind: input, shape index: {}]   ;;  %s1582_s3 = inlined_call_operand.vmem [shape: f32[100], index: 3, kind: input, shape index: {}]   ;;  %s1583_s4 = inlined_call_operand.vmem [shape: f32[10], index: 4, kind: input, shape index: {}]   ;;  %s1584_s5 = inlined_call_operand.vmem [shape: f32[10], index: 5, kind: input, shape index: {}]   ;;  %s1585_s6 = inlined_call_operand.<no memory space> [shape: f32[1], index: 6, kind: input, shape index: {}]   ;;  %s1586_s7 = inlined_call_operand.vmem [shape: f32[8,128], index: 7, kind: output, shape index: {}]  }
   0x1   :  { %1587 = sst [smem:[#allocation29_spill]] %s1585_s6 }
   0x2   :  { %1588 = sst [smem:[#allocation30_spill]] %s1586_s7 }
   0x3   :  { %13 = vsyncpa [#allocation4], 0 }
   0x4   :  { %14 = vsyncpa [#allocation6], 0  ;;  %s32_s26 = sshll.u32 %s1581_s2, 4  ;;  %s33_s26 = int_to_ptr.vmem [resolvable:$true] %s32_s26 }
   0x5   :  { %15 = vsyncpa [#allocation9], 0  ;;  %s50_s29 = sshll.u32 %s1583_s4, 4  ;;  %s896_s30 = smov [#allocation5]   ;;  %s51_s29 = int_to_ptr.vmem [resolvable:$true] %s50_s29 }
   0x6   :  { %35 = dma.vmem_to_smem %s33_s26, 16, %s896_s30, [#allocation6]  }
   0x7   :  { %s897_s8 = smov [#allocation8]   ;;  %s23_s11 = sshll.u32 %s1580_s1, 4  ;;  %s24_s11 = int_to_ptr.vmem [resolvable:$true] %s23_s11 }
   0x8   :  { %53 = dma.vmem_to_smem %s51_s29, 16, %s897_s8, [#allocation9]  }
   0x9   :  { %s41_s2 = sshll.u32 %s1582_s3, 4  ;;  %s898_s14 = smov [#allocation3]   ;;  %s42_s2 = int_to_ptr.vmem [resolvable:$true] %s41_s2 }
   0xa   :  { %26 = dma.vmem_to_smem %s24_s11, 16, %s898_s14, [#allocation4]  }
   0xb   :  { %s899_s15 = smov [#allocation7]   ;;  %s59_s17 = sshll.u32 %s1584_s5, 4  ;;  %s60_s17 = int_to_ptr.vmem [resolvable:$true] %s59_s17 }
   0xc   :  { %44 = dma.vmem_to_smem %s42_s2, 16, %s899_s15, [#allocation6]  }
   0xd   :  { %s900_s18 = smov [#allocation10]  }
   0xe   :  { %62 = dma.vmem_to_smem %s60_s17, 16, %s900_s18, [#allocation9]  }
   0xf   :  { %890 = dma.done.wait [#allocation4], 16  }
  0x10   :  { %891 = vsyncadd [#allocation4], 4294967280 }
  0x11   :  { %892 = dma.done.wait [#allocation6], 32  }
  0x12   :  { %893 = vsyncadd [#allocation6], 4294967264 }
  0x13   :  { %894 = dma.done.wait [#allocation9], 32  }
  0x14   :  { %895 = vsyncadd [#allocation9], 4294967264 }
  0x15   :  { %85 = sfence }
  0x16   :  { %s956_s1 = sld [smem:[#allocation3]]  ;;  %v1031_v0 = vld [vmem:[%s1579_s0] sm:$0xff]  ;;  %v1036_v1 = vld [vmem:[%s1579_s0 + $0x8] sm:$0xff] }
  0x17   :  { %s958_s3 = sld [smem:[#allocation3 + $0x1]] }
  0x18   :  { %s960_s19 = sld [smem:[#allocation5]] }
  0x19   :  { %s962_s20 = sld [smem:[#allocation3 + $0x2]] }
  0x1a   :  { %s964_s21 = sld [smem:[#allocation3 + $0x3]] }
  0x1b   :  { %s966_s5 = sld [smem:[#allocation5 + $0x1]] }
  0x1c   :  { %s968_s22 = sld [smem:[#allocation3 + $0x4]]  ;;  %v90_v2 = vstv %s956_s1 }
  0x1d   :  { %s970_s23 = sld [smem:[#allocation3 + $0x5]]  ;;  %v93_v3 = vstv %s958_s3  ;;  %v91_v4 = vmul.f32 %v90_v2, %v1031_v0 }
  0x1e   :  { %s972_s24 = sld [smem:[#allocation5 + $0x2]]  ;;  %v94_v5 = vmul.f32 %v1036_v1, %v93_v3  ;;  %v97_v13 = vstv %s960_s19 }
  0x1f   :  { %s974_s25 = sld [smem:[#allocation3 + $0x6]]  ;;  %v101_v6 = vstv %s962_s20 }
  0x20   :  { %s976_s26 = sld [smem:[#allocation3 + $0x7]]  ;;  %v104_v7 = vstv %s964_s21  ;;  %v95_v10 = vadd.f32 %v94_v5, %v91_v4  ;;  %v102_v11 = vmul.f32 %v101_v6, %v1031_v0 }
  0x21   :  { %s978_s27 = sld [smem:[#allocation5 + $0x3]]  ;;  %v105_v12 = vmul.f32 %v1036_v1, %v104_v7  ;;  %v108_v20 = vstv %s966_s5 }
  0x22   :  { %s980_s28 = sld [smem:[#allocation3 + $0x8]]  ;;  %v112_v8 = vstv %s968_s22  ;;  %v98_v18 = vadd.f32 %v97_v13, %v95_v10 }
  0x23   :  { %s982_s29 = sld [smem:[#allocation3 + $0x9]]  ;;  %v115_v9 = vstv %s970_s23  ;;  %v113_v14 = vmul.f32 %v112_v8, %v1031_v0  ;;  %v106_v19 = vadd.f32 %v105_v12, %v102_v11 }
  0x24   :  { %s984_s30 = sld [smem:[#allocation5 + $0x4]]  ;;  %v116_v15 = vmul.f32 %v1036_v1, %v115_v9  ;;  %v119_v24 = vstv %s972_s24  ;;  %v1089_v27 = vmax.f32 %v98_v18, 0.0 }
  0x25   :  { %s986_s8 = sld [smem:[#allocation3 + $0xa]]  ;;  %v123_v16 = vstv %s974_s25  ;;  %v109_v28 = vadd.f32 %v108_v20, %v106_v19 }
  0x26   :  { %s988_s9 = sld [smem:[#allocation3 + $0xb]]  ;;  %v126_v17 = vstv %s976_s26  ;;  %v117_v21 = vadd.f32 %v116_v15, %v113_v14  ;;  %v124_v22 = vmul.f32 %v123_v16, %v1031_v0 }
  0x27   :  { %s990_s10 = sld [smem:[#allocation5 + $0x5]]  ;;  %v127_v23 = vmul.f32 %v1036_v1, %v126_v17  ;;  %v130_v34 = vstv %s978_s27  ;;  %v1103_v35 = vmax.f32 %v109_v28, 0.0 }
  0x28   :  { %s992_s11 = sld [smem:[#allocation3 + $0xc]]  ;;  %v134_v25 = vstv %s980_s28  ;;  %v120_v30 = vadd.f32 %v119_v24, %v117_v21 }
  0x29   :  { %s994_s12 = sld [smem:[#allocation3 + $0xd]]  ;;  %v137_v26 = vstv %s982_s29  ;;  %v128_v31 = vadd.f32 %v127_v23, %v124_v22  ;;  %v135_v32 = vmul.f32 %v134_v25, %v1031_v0 }
  0x2a   :  { %1589 = sst [smem:[#allocation14_spill]] %s984_s30  ;;  %v138_v33 = vmul.f32 %v1036_v1, %v137_v26  ;;  %v1114_v41 = vmax.f32 %v120_v30, 0.0 }
  0x2b   :  { %s996_s13 = sld [smem:[#allocation5 + $0x6]]  ;;  %v145_v36 = vstv %s986_s8  ;;  %v131_v42 = vadd.f32 %v130_v34, %v128_v31 }
  0x2c   :  { %s998_s2 = sld [smem:[#allocation3 + $0xe]]  ;;  %v148_v37 = vstv %s988_s9  ;;  %v139_v43 = vadd.f32 %v138_v33, %v135_v32  ;;  %v146_v44 = vmul.f32 %v145_v36, %v1031_v0 }
  0x2d   :  { %1590 = sst [smem:[#allocation15_spill]] %s990_s10  ;;  %v149_v45 = vmul.f32 %v1036_v1, %v148_v37  ;;  %v1138_v57 = vmax.f32 %v131_v42, 0.0 }
  0x2e   :  { %s1000_s14 = sld [smem:[#allocation3 + $0xf]]  ;;  %v156_v46 = vstv %s992_s11 }
  0x2f   :  { %s1002_s15 = sld [smem:[#allocation5 + $0x7]]  ;;  %v159_v47 = vstv %s994_s12  ;;  %v157_v54 = vmul.f32 %v156_v46, %v1031_v0  ;;  %v150_v58 = vadd.f32 %v149_v45, %v146_v44 }
  0x30   :  { %s1004_s4 = sld [smem:[#allocation3 + $0x10]]  ;;  %v160_v55 = vmul.f32 %v1036_v1, %v159_v47 }
  0x31   :  { %1591 = sst [smem:[#allocation16_spill]] %s996_s13 }
  0x32   :  { %s1006_s16 = sld [smem:[#allocation3 + $0x11]]  ;;  %v167_v48 = vstv %s998_s2  ;;  %v161_v5 = vadd.f32 %v160_v55, %v157_v54 }
  0x33   :  { %s1008_s17 = sld [smem:[#allocation5 + $0x8]]  ;;  %v168_v59 = vmul.f32 %v167_v48, %v1031_v0 }
  0x34   :  { %1592 = sst [smem:[#allocation17_spill]] %s1000_s14 }
  0x35   :  { %1593 = sst [smem:[#allocation18_spill]] %s1002_s15 }
  0x36   :  { %1594 = sst [smem:[#allocation19_spill]] %s1004_s4 }
  0x37   :  { %s1010_s18 = sld [smem:[#allocation3 + $0x12]] }
  0x38   :  { %1595 = sst [smem:[#allocation20_spill]] %s1006_s16 }
  0x39   :  { %1596 = sst [smem:[#allocation21_spill]] %s1008_s17 }
  0x3a   :  { %s1012_s7 = sld [smem:[#allocation3 + $0x13]] }
  0x3b   :  { %s1014_s6 = sld [smem:[#allocation5 + $0x9]] }
  0x3c   :  { %s1016_s13 = sld [smem:[#allocation8]] }
  0x3d   :  { %1597 = sst [smem:[#allocation22_spill]] %s1010_s18 }
  0x3e   :  { %s1018_s10 = sld [smem:[#allocation7]] }
  0x3f   :  { %s1020_s15 = sld [smem:[#allocation7 + $0x1]] }
  0x40   :  { %1598 = sst [smem:[#allocation23_spill]] %s1012_s7 }
  0x41   :  { %1599 = sst [smem:[#allocation24_spill]] %s1014_s6 }
  0x42   :  { %s1022_s30 = sld [smem:[#allocation7 + $0x2]]  ;;  %v203_v39 = vstv %s1016_s13 }
  0x43   :  { %s1024_s4 = sld [smem:[#allocation7 + $0x3]] }
  0x44   :  { %s1026_s17 = sld [smem:[#allocation7 + $0x4]]  ;;  %v201_v29 = vstv %s1018_s10 }
  0x45   :  { %s1040_s14 = sld [smem:[#allocation7 + $0x5]]  ;;  %v202_v38 = vmul.f32 %v201_v29, %v1089_v27  ;;  %v206_v40 = vstv %s1020_s15 }
  0x46   :  { %s1048_s16 = sld [smem:[#allocation7 + $0x8]]  ;;  %v207_v51 = vmul.f32 %v206_v40, %v1103_v35 }
  0x47   :  { %s1052_s0 = sld [smem:[#allocation7 + $0x9]]  ;;  %v204_v50 = vadd.f32 %v203_v39, %v202_v38 }
  0x48   :  { %1600 = sst [smem:[#allocation25_spill]] %s1022_s30 }
  0x49   :  { %1601 = sst [smem:[#allocation26_spill]] %s1024_s4  ;;  %v208_v63 = vadd.f32 %v207_v51, %v204_v50 }
  0x4a   :  { %s1042_s30 = sld [smem:[#allocation7 + $0x6]]  ;;  %v218_v17 = vstv %s1026_s17 }
  0x4b   :  { %s1044_s4 = sld [smem:[#allocation7 + $0x7]]  ;;  %v222_v31 = vstv %s1040_s14 }
  0x4c   :  { %s1054_s6 = sld [smem:[#allocation8 + $0x1]] }
  0x4d   :  { %s1058_s7 = sld [smem:[#allocation7 + $0xa]] }
  0x4e   :  { %s1062_s1 = sld [smem:[#allocation7 + $0xb]] }
  0x4f   :  { %s1065_s3 = sld [smem:[#allocation7 + $0xc]] }
  0x50   :  { %s1069_s20 = sld [smem:[#allocation7 + $0xd]]  ;;  %v226_v47 = vstv %s1042_s30 }
  0x51   :  { %s1073_s21 = sld [smem:[#allocation7 + $0xe]] }
  0x52   :  { %s1075_s22 = sld [smem:[#allocation7 + $0xf]]  ;;  %v246_v7 = vstv %s1054_s6 }
  0x53   :  { %s1078_s19 = sld [smem:[#allocation7 + $0x10]]  ;;  %v244_v56 = vstv %s1058_s7 }
  0x54   :  { %s1082_s23 = sld [smem:[#allocation7 + $0x11]]  ;;  %v245_v4 = vmul.f32 %v244_v56, %v1089_v27  ;;  %v249_v8 = vstv %s1062_s1 }
  0x55   :  { %s1087_s25 = sld [smem:[#allocation7 + $0x12]]  ;;  %v250_v19 = vmul.f32 %v249_v8, %v1103_v35  ;;  %v253_v23 = vstv %s1065_s3 }
  0x56   :  { %s1091_s5 = sld [smem:[#allocation7 + $0x13]]  ;;  %v247_v18 = vadd.f32 %v246_v7, %v245_v4  ;;  %v254_v33 = vmul.f32 %v253_v23, %v1114_v41  ;;  %v257_v39 = vstv %s1069_s20 }
  0x57   :  { %s1094_s26 = sld [smem:[#allocation8 + $0x2]] }
  0x58   :  { %s1098_s24 = sld [smem:[#allocation7 + $0x14]]  ;;  %v251_v32 = vadd.f32 %v250_v19, %v247_v18 }
  0x59   :  { %s1101_s28 = sld [smem:[#allocation7 + $0x15]]  ;;  %v269_v19 = vstv %s1078_s19 }
  0x5a   :  { %s1604_s29 = sld [smem:[#allocation17_spill]] }
  0x5b   :  { %1602 = sst [smem:[#allocation27_spill]] %s1087_s25 }
  0x5c   :  { %1603 = sst [smem:[#allocation28_spill]] %s1091_s5 }
  0x5d   :  { %s1108_s10 = sld [smem:[#allocation7 + $0x16]]  ;;  %v289_v50 = vstv %s1094_s26 }
  0x5e   :  { %s1605_s18 = sld [smem:[#allocation14_spill]]  ;;  %v287_v34 = vstv %s1098_s24 }
  0x5f   :  { %s1112_s5 = sld [smem:[#allocation7 + $0x17]]  ;;  %v288_v48 = vmul.f32 %v287_v34, %v1089_v27  ;;  %v292_v51 = vstv %s1101_s28 }
  0x60   :  { %s1606_s27 = sld [smem:[#allocation25_spill]]  ;;  %v170_v49 = vstv %s1604_s29 }
  0x61   :  { %s1116_s25 = sld [smem:[#allocation7 + $0x18]]  ;;  %v171_v60 = vmul.f32 %v1036_v1, %v170_v49  ;;  %v255_v49 = vadd.f32 %v254_v33, %v251_v32 }
  0x62   :  { %s1122_s8 = sld [smem:[#allocation7 + $0x19]] }
  0x63   :  { %s1608_s9 = sld [smem:[#allocation15_spill]]  ;;  %v172_v10 = vadd.f32 %v171_v60, %v168_v59  ;;  %v296_v4 = vstv %s1108_s10 }
  0x64   :  { %s1127_s13 = sld [smem:[#allocation7 + $0x1a]]  ;;  %v141_v52 = vstv %s1605_s18 }
  0x65   :  { %s1609_s15 = sld [smem:[#allocation26_spill]]  ;;  %v142_v61 = vadd.f32 %v141_v52, %v139_v43 }
  0x66   :  { %v210_v53 = vstv %s1606_s27  ;;  %s1611_s11 = sld [smem:[#allocation16_spill]] }
  0x67   :  { %1607 = sst [smem:[#allocation17_spill]] %s1116_s25  ;;  %v211_v2 = vmul.f32 %v210_v53, %v1114_v41  ;;  %v1161_v13 = vmax.f32 %v142_v61, 0.0  ;;  %v261_v53 = vstv %s1073_s21  ;;  %v230_v61 = vstv %s1044_s4 }
  0x68   :  { %s1131_s25 = sld [smem:[#allocation7 + $0x1b]] }
  0x69   :  { %s1136_s12 = sld [smem:[#allocation7 + $0x1c]]  ;;  %v152_v62 = vstv %s1608_s9  ;;  %v212_v15 = vadd.f32 %v211_v2, %v208_v63  ;;  %v219_v30 = vmul.f32 %v218_v17, %v1161_v13  ;;  %v293_v63 = vmul.f32 %v292_v51, %v1103_v35 }
  0x6a   :  { %s1142_s2 = sld [smem:[#allocation7 + $0x1d]]  ;;  %v153_v9 = vadd.f32 %v152_v62, %v150_v58  ;;  %v290_v62 = vadd.f32 %v289_v50, %v288_v48 }
  0x6b   :  { %s1614_s29 = sld [smem:[#allocation19_spill]]  ;;  %v214_v3 = vstv %s1609_s15 }
  0x6c   :  { %s1615_s18 = sld [smem:[#allocation20_spill]]  ;;  %v163_v6 = vstv %s1611_s11  ;;  %v215_v16 = vmul.f32 %v214_v3, %v1138_v57  ;;  %v1176_v24 = vmax.f32 %v153_v9, 0.0  ;;  %v262_v3 = vmul.f32 %v261_v53, %v1161_v13 }
  0x6d   :  { %s1616_s7 = sld [smem:[#allocation18_spill]]  ;;  %v164_v20 = vadd.f32 %v163_v6, %v161_v5  ;;  %v265_v5 = vstv %s1075_s22 }
  0x6e   :  { %1610 = sst [smem:[#allocation14_spill]] %s1131_s25  ;;  %v216_v29 = vadd.f32 %v215_v16, %v212_v15  ;;  %v223_v46 = vmul.f32 %v222_v31, %v1176_v24  ;;  %v294_v15 = vadd.f32 %v293_v63, %v290_v62  ;;  %v297_v16 = vmul.f32 %v296_v4, %v1114_v41 }
  0x6f   :  { %1612 = sst [smem:[#allocation25_spill]] %s1136_s12  ;;  %v1190_v36 = vmax.f32 %v164_v20, 0.0  ;;  %v266_v18 = vmul.f32 %v265_v5, %v1176_v24  ;;  %v300_v20 = vstv %s1112_s5  ;;  %v312_v4 = vstv %s1127_s13 }
  0x70   :  { %1613 = sst [smem:[#allocation15_spill]] %s1142_s2  ;;  %v220_v45 = vadd.f32 %v219_v30, %v216_v29  ;;  %v298_v32 = vadd.f32 %v297_v16, %v294_v15  ;;  %v301_v33 = vmul.f32 %v300_v20, %v1138_v57 }
  0x71   :  { %s1146_s27 = sld [smem:[#allocation8 + $0x3]]  ;;  %v178_v11 = vstv %s1614_s29  ;;  %v227_v56 = vmul.f32 %v226_v47, %v1190_v36  ;;  %v270_v31 = vmul.f32 %v269_v19, %v1190_v36 }
  0x72   :  { %s1150_s12 = sld [smem:[#allocation7 + $0x1e]]  ;;  %v181_v12 = vstv %s1615_s18  ;;  %v179_v21 = vmul.f32 %v178_v11, %v1031_v0  ;;  %v224_v60 = vadd.f32 %v223_v46, %v220_v45 }
  0x73   :  { %s1155_s2 = sld [smem:[#allocation7 + $0x1f]]  ;;  %v174_v14 = vstv %s1616_s7  ;;  %v182_v22 = vmul.f32 %v1036_v1, %v181_v12 }
  0x74   :  { %s1159_s9 = sld [smem:[#allocation7 + $0x20]]  ;;  %v175_v25 = vadd.f32 %v174_v14, %v172_v10  ;;  %v228_v12 = vadd.f32 %v227_v56, %v224_v60  ;;  %v234_v14 = vstv %s1048_s16 }
  0x75   :  { %s1617_s15 = sld [smem:[#allocation22_spill]]  ;;  %v183_v37 = vadd.f32 %v182_v22, %v179_v21 }
  0x76   :  { %s1618_s25 = sld [smem:[#allocation23_spill]]  ;;  %v1196_v40 = vmax.f32 %v175_v25, 0.0 }
  0x77   :  { %s1165_s11 = sld [smem:[#allocation7 + $0x21]]  ;;  %v332_v58 = vstv %s1146_s27 }
  0x78   :  { %s1169_s6 = sld [smem:[#allocation7 + $0x22]]  ;;  %v330_v44 = vstv %s1150_s12  ;;  %v231_v10 = vmul.f32 %v230_v61, %v1196_v40 }
  0x79   :  { %s1174_s1 = sld [smem:[#allocation7 + $0x23]]  ;;  %v331_v54 = vmul.f32 %v330_v44, %v1089_v27  ;;  %v335_v59 = vstv %s1155_s2 }
  0x7a   :  { %s1619_s29 = sld [smem:[#allocation21_spill]]  ;;  %v336_v7 = vmul.f32 %v335_v59, %v1103_v35  ;;  %v339_v11 = vstv %s1159_s9  ;;  %v232_v30 = vadd.f32 %v231_v10, %v228_v12 }
  0x7b   :  { %s1178_s17 = sld [smem:[#allocation7 + $0x24]]  ;;  %v189_v26 = vstv %s1617_s15  ;;  %v333_v6 = vadd.f32 %v332_v58, %v331_v54  ;;  %v340_v22 = vmul.f32 %v339_v11, %v1114_v41 }
  0x7c   :  { %v192_v28 = vstv %s1618_s25  ;;  %s1183_s18 = sld [smem:[#allocation7 + $0x25]]  ;;  %v190_v42 = vmul.f32 %v189_v26, %v1031_v0  ;;  %v258_v0 = vmul.f32 %v257_v39, %v1138_v57 }
  0x7d   :  { %s1188_s3 = sld [smem:[#allocation7 + $0x26]]  ;;  %v193_v43 = vmul.f32 %v1036_v1, %v192_v28  ;;  %v337_v21 = vadd.f32 %v336_v7, %v333_v6  ;;  %v238_v28 = vstv %s1052_s0  ;;  %v343_v29 = vstv %s1165_s11 }
  0x7e   :  { %s1194_s25 = sld [smem:[#allocation7 + $0x27]]  ;;  %v259_v2 = vadd.f32 %v258_v0, %v255_v49  ;;  %v347_v47 = vstv %s1169_s6  ;;  %v302_v0 = vadd.f32 %v301_v33, %v298_v32 }
  0x7f   :  { %s1620_s14 = sld [smem:[#allocation24_spill]]  ;;  %v194_v55 = vadd.f32 %v193_v43, %v190_v42  ;;  %v341_v42 = vadd.f32 %v340_v22, %v337_v21  ;;  %v344_v43 = vmul.f32 %v343_v29, %v1138_v57  ;;  %v348_v56 = vmul.f32 %v347_v47, %v1161_v13 }
  0x80   :  { %v185_v38 = vstv %s1619_s29  ;;  %s1201_s24 = sld [smem:[#allocation8 + $0x4]]  ;;  %v263_v17 = vadd.f32 %v262_v3, %v259_v2  ;;  %v351_v60 = vstv %s1174_s1 }
  0x81   :  { %s1206_s20 = sld [smem:[#allocation7 + $0x28]]  ;;  %v186_v1 = vadd.f32 %v185_v38, %v183_v37  ;;  %v273_v37 = vstv %s1082_s23  ;;  %v352_v10 = vmul.f32 %v351_v60, %v1176_v24  ;;  %v355_v15 = vstv %s1178_s17 }
  0x82   :  { %s1211_s7 = sld [smem:[#allocation7 + $0x29]]  ;;  %v267_v34 = vadd.f32 %v266_v18, %v263_v17  ;;  %v274_v51 = vmul.f32 %v273_v37, %v1196_v40  ;;  %v313_v18 = vmul.f32 %v312_v4, %v1190_v36  ;;  %v359_v33 = vstv %s1183_s18 }
  0x83   :  { %s1216_s30 = sld [smem:[#allocation7 + $0x2a]]  ;;  %v1235_v8 = vmax.f32 %v186_v1, 0.0  ;;  %v308_v1 = vstv %s1122_s8 }
  0x84   :  { %s1221_s12 = sld [smem:[#allocation7 + $0x2b]]  ;;  %v271_v54 = vadd.f32 %v270_v31, %v267_v34  ;;  %v309_v63 = vmul.f32 %v308_v1, %v1176_v24  ;;  %v356_v31 = vmul.f32 %v355_v15, %v1190_v36  ;;  %v363_v1 = vstv %s1188_s3 }
  0x85   :  { %v196_v52 = vstv %s1620_s14  ;;  %s1225_s21 = sld [smem:[#allocation7 + $0x2c]]  ;;  %v235_v26 = vmul.f32 %v234_v14, %v1235_v8  ;;  %v367_v4 = vstv %s1194_s25 }
  0x86   :  { %s1229_s26 = sld [smem:[#allocation7 + $0x2d]]  ;;  %v197_v9 = vadd.f32 %v196_v52, %v194_v55  ;;  %v375_v44 = vstv %s1201_s24  ;;  %v345_v55 = vadd.f32 %v344_v43, %v341_v42  ;;  %v275_v7 = vadd.f32 %v274_v51, %v271_v54 }
  0x87   :  { %s1233_s28 = sld [smem:[#allocation7 + $0x2e]]  ;;  %v373_v23 = vstv %s1206_s20  ;;  %v236_v48 = vadd.f32 %v235_v26, %v232_v30 }
  0x88   :  { %s1239_s4 = sld [smem:[#allocation7 + $0x2f]]  ;;  %v1254_v25 = vmax.f32 %v197_v9, 0.0  ;;  %v374_v39 = vmul.f32 %v373_v23, %v1089_v27  ;;  %v378_v45 = vstv %s1211_s7  ;;  %v349_v9 = vadd.f32 %v348_v56, %v345_v55 }
  0x89   :  { %s1243_s22 = sld [smem:[#allocation7 + $0x30]]  ;;  %v379_v53 = vmul.f32 %v378_v45, %v1103_v35  ;;  %v382_v58 = vstv %s1216_s30 }
  0x8a   :  { %s1248_s10 = sld [smem:[#allocation7 + $0x31]]  ;;  %v239_v46 = vmul.f32 %v238_v28, %v1254_v25  ;;  %v376_v52 = vadd.f32 %v375_v44, %v374_v39  ;;  %v383_v6 = vmul.f32 %v382_v58, %v1114_v41  ;;  %v386_v11 = vstv %s1221_s12 }
  0x8b   :  { %s1621_s2 = sld [smem:[#allocation17_spill]]  ;;  %v387_v23 = vmul.f32 %v386_v11, %v1138_v57  ;;  %v390_v26 = vstv %s1225_s21  ;;  %v353_v30 = vadd.f32 %v352_v10, %v349_v9 }
  0x8c   :  { %s1252_s16 = sld [smem:[#allocation8 + $0x5]]  ;;  %v1301_v3 = vadd.f32 %v239_v46, %v236_v48  ;;  %v380_v5 = vadd.f32 %v379_v53, %v376_v52  ;;  %v391_v39 = vmul.f32 %v390_v26, %v1161_v13 }
  0x8d   :  { %s1259_s19 = sld [smem:[#allocation7 + $0x32]] }
  0x8e   :  { %s1622_s5 = sld [smem:[#allocation27_spill]]  ;;  %v241_v21 = vmax.f32 %v1301_v3, 0.0  ;;  %v384_v22 = vadd.f32 %v383_v6, %v380_v5  ;;  %v398_v5 = vstv %s1233_s28  ;;  %v402_v6 = vstv %s1239_s4 }
  0x8f   :  { %s1263_s27 = sld [smem:[#allocation7 + $0x33]] }
  0x90   :  { %s1268_s0 = sld [smem:[#allocation7 + $0x34]]  ;;  %v388_v44 = vadd.f32 %v387_v23, %v384_v22  ;;  %v368_v22 = vmul.f32 %v367_v4, %v1254_v25  ;;  %v403_v23 = vmul.f32 %v402_v6, %v1196_v40 }
  0x91   :  { %v304_v38 = vstv %s1621_s2  ;;  %s1273_s9 = sld [smem:[#allocation7 + $0x35]] }
  0x92   :  { %s1277_s15 = sld [smem:[#allocation7 + $0x36]]  ;;  %v305_v50 = vmul.f32 %v304_v38, %v1161_v13  ;;  %v418_v19 = vstv %s1252_s16  ;;  %v392_v60 = vadd.f32 %v391_v39, %v388_v44 }
  0x93   :  { %s1623_s23 = sld [smem:[#allocation28_spill]]  ;;  %v416_v2 = vstv %s1259_s19 }
  0x94   :  { %v277_v49 = vstv %s1622_s5  ;;  %s1281_s11 = sld [smem:[#allocation7 + $0x37]]  ;;  %v306_v62 = vadd.f32 %v305_v50, %v302_v0  ;;  %v417_v16 = vmul.f32 %v416_v2, %v1089_v27  ;;  %v360_v0 = vmul.f32 %v359_v33, %v1196_v40 }
  0x95   :  { %s1286_s6 = sld [smem:[#allocation7 + $0x38]]  ;;  %v278_v59 = vmul.f32 %v277_v49, %v1235_v8  ;;  %v421_v20 = vstv %s1263_s27  ;;  %v357_v49 = vadd.f32 %v356_v31, %v353_v30  ;;  %v394_v50 = vstv %s1229_s26 }
  0x96   :  { %s1290_s29 = sld [smem:[#allocation7 + $0x39]]  ;;  %v310_v17 = vadd.f32 %v309_v63, %v306_v62  ;;  %v419_v34 = vadd.f32 %v418_v19, %v417_v16  ;;  %v422_v37 = vmul.f32 %v421_v20, %v1103_v35  ;;  %v425_v42 = vstv %s1268_s0 }
  0x97   :  { %s1294_s14 = sld [smem:[#allocation7 + $0x3a]]  ;;  %v279_v28 = vadd.f32 %v278_v59, %v275_v7  ;;  %v426_v53 = vmul.f32 %v425_v42, %v1114_v41  ;;  %v429_v55 = vstv %s1273_s9  ;;  %v361_v63 = vadd.f32 %v360_v0, %v357_v49 }
  0x98   :  { %s1624_s8 = sld [smem:[#allocation14_spill]]  ;;  %v314_v38 = vadd.f32 %v313_v18, %v310_v17  ;;  %v423_v52 = vadd.f32 %v422_v37, %v419_v34  ;;  %v364_v2 = vmul.f32 %v363_v1, %v1235_v8  ;;  %v430_v9 = vmul.f32 %v429_v55, %v1138_v57 }
  0x99   :  { %v281_v61 = vstv %s1623_s23  ;;  %s1299_s24 = sld [smem:[#allocation7 + $0x3b]]  ;;  %v433_v10 = vstv %s1277_s15  ;;  %v399_v18 = vmul.f32 %v398_v5, %v1190_v36 }
  0x9a   :  { %s1305_s1 = sld [smem:[#allocation8 + $0x6]]  ;;  %v282_v12 = vmul.f32 %v281_v61, %v1254_v25  ;;  %v395_v61 = vmul.f32 %v394_v50, %v1176_v24  ;;  %v427_v7 = vadd.f32 %v426_v53, %v423_v52  ;;  %v365_v20 = vadd.f32 %v364_v2, %v361_v63 }
  0x9b   :  { %s1309_s20 = sld [smem:[#allocation7 + $0x3c]]  ;;  %v434_v26 = vmul.f32 %v433_v10, %v1161_v13 }
  0x9c   :  { %s1315_s13 = sld [smem:[#allocation7 + $0x3d]]  ;;  %v1356_v54 = vadd.f32 %v282_v12, %v279_v28  ;;  %v396_v17 = vadd.f32 %v395_v61, %v392_v60  ;;  %v431_v28 = vadd.f32 %v430_v9, %v427_v7  ;;  %v445_v60 = vstv %s1290_s29 }
  0x9d   :  { %s1625_s7 = sld [smem:[#allocation25_spill]]  ;;  %v449_v61 = vstv %s1294_s14 }
  0x9e   :  { %v316_v14 = vstv %s1624_s8  ;;  %s1320_s30 = sld [smem:[#allocation7 + $0x3e]]  ;;  %v284_v11 = vmax.f32 %v1356_v54, 0.0  ;;  %v435_v49 = vadd.f32 %v434_v26, %v431_v28 }
  0x9f   :  { %s1325_s17 = sld [smem:[#allocation7 + $0x3f]]  ;;  %v317_v29 = vmul.f32 %v316_v14, %v1196_v40 }
  0xa0   :  { %s1329_s12 = sld [smem:[#allocation7 + $0x40]]  ;;  %v461_v46 = vstv %s1305_s1 }
  0xa1   :  { %s1334_s2 = sld [smem:[#allocation7 + $0x41]]  ;;  %v459_v43 = vstv %s1309_s20  ;;  %v318_v59 = vadd.f32 %v317_v29, %v314_v38  ;;  %v437_v29 = vstv %s1281_s11  ;;  %v400_v38 = vadd.f32 %v399_v18, %v396_v17 }
  0xa2   :  { %s1626_s21 = sld [smem:[#allocation15_spill]]  ;;  %v460_v45 = vmul.f32 %v459_v43, %v1089_v27  ;;  %v464_v47 = vstv %s1315_s13  ;;  %v438_v0 = vmul.f32 %v437_v29, %v1176_v24 }
  0xa3   :  { %v320_v32 = vstv %s1625_s7  ;;  %s1339_s16 = sld [smem:[#allocation7 + $0x42]]  ;;  %v465_v58 = vmul.f32 %v464_v47, %v1103_v35  ;;  %v404_v55 = vadd.f32 %v403_v23, %v400_v38 }
  0xa4   :  { %s1344_s18 = sld [smem:[#allocation7 + $0x43]]  ;;  %v321_v48 = vmul.f32 %v320_v32, %v1235_v8  ;;  %v462_v56 = vadd.f32 %v461_v46, %v460_v45  ;;  %v468_v62 = vstv %s1320_s30  ;;  %v406_v45 = vstv %s1243_s22 }
  0xa5   :  { %s1349_s19 = sld [smem:[#allocation7 + $0x44]]  ;;  %v469_v15 = vmul.f32 %v468_v62, %v1114_v41  ;;  %v472_v19 = vstv %s1325_s17  ;;  %v439_v4 = vadd.f32 %v438_v0, %v435_v49 }
  0xa6   :  { %s1354_s5 = sld [smem:[#allocation7 + $0x45]]  ;;  %v466_v14 = vadd.f32 %v465_v58, %v462_v56  ;;  %v322_v16 = vadd.f32 %v321_v48, %v318_v59  ;;  %v473_v33 = vmul.f32 %v472_v19, %v1138_v57  ;;  %v476_v39 = vstv %s1329_s12 }
  0xa7   :  { %s1360_s26 = sld [smem:[#allocation8 + $0x7]]  ;;  %v1411_v48 = vadd.f32 %v368_v22, %v365_v20  ;;  %v477_v52 = vmul.f32 %v476_v39, %v1161_v13  ;;  %v407_v56 = vmul.f32 %v406_v45, %v1235_v8  ;;  %v410_v58 = vstv %s1248_s10 }
  0xa8   :  { %v324_v51 = vstv %s1626_s21  ;;  %s1364_s3 = sld [smem:[#allocation7 + $0x46]]  ;;  %v470_v32 = vadd.f32 %v469_v15, %v466_v14  ;;  %v480_v59 = vstv %s1334_s2  ;;  %v411_v9 = vmul.f32 %v410_v58, %v1254_v25 }
  0xa9   :  { %s1369_s27 = sld [smem:[#allocation7 + $0x47]]  ;;  %v325_v12 = vmul.f32 %v324_v51, %v1254_v25  ;;  %v441_v51 = vstv %s1286_s6  ;;  %v370_v7 = vmax.f32 %v1411_v48, 0.0  ;;  %v408_v14 = vadd.f32 %v407_v56, %v404_v55 }
  0xaa   :  { %s1374_s0 = sld [smem:[#allocation7 + $0x48]]  ;;  %v474_v1 = vadd.f32 %v473_v33, %v470_v32  ;;  %v442_v5 = vmul.f32 %v441_v51, %v1190_v36  ;;  %v446_v15 = vmul.f32 %v445_v60, %v1196_v40  ;;  %v484_v17 = vstv %s1339_s16 }
  0xab   :  { %s1379_s25 = sld [smem:[#allocation7 + $0x49]]  ;;  %v1405_v44 = vadd.f32 %v325_v12, %v322_v16  ;;  %v481_v12 = vmul.f32 %v480_v59, %v1176_v24  ;;  %v450_v16 = vmul.f32 %v449_v61, %v1235_v8  ;;  %v1480_v55 = vadd.f32 %v411_v9, %v408_v14 }
  0xac   :  { %s1383_s28 = sld [smem:[#allocation7 + $0x4a]]  ;;  %v478_v10 = vadd.f32 %v477_v52, %v474_v1  ;;  %v443_v23 = vadd.f32 %v442_v5, %v439_v4  ;;  %v492_v52 = vstv %s1349_s19 }
  0xad   :  { %s1388_s4 = sld [smem:[#allocation7 + $0x4b]]  ;;  %v504_v31 = vstv %s1360_s26  ;;  %v327_v2 = vmax.f32 %v1405_v44, 0.0  ;;  %v493_v5 = vmul.f32 %v492_v52, %v1235_v8 }
  0xae   :  { %v502_v30 = vstv %s1364_s3  ;;  %s1393_s9 = sld [smem:[#allocation7 + $0x4c]] }
  0xaf   :  { %v503_v34 = vmul.f32 %v502_v30, %v1089_v27  ;;  %v507_v37 = vstv %s1369_s27  ;;  %s1398_s15 = sld [smem:[#allocation7 + $0x4d]]  ;;  %v482_v30 = vadd.f32 %v481_v12, %v478_v10  ;;  %v496_v12 = vstv %s1354_s5 }
  0xb0   :  { %v508_v42 = vmul.f32 %v507_v37, %v1103_v35  ;;  %v511_v43 = vstv %s1374_s0  ;;  %s1403_s23 = sld [smem:[#allocation7 + $0x4e]] }
  0xb1   :  { %v505_v46 = vadd.f32 %v504_v31, %v503_v34  ;;  %v512_v47 = vmul.f32 %v511_v43, %v1114_v41  ;;  %s1409_s11 = sld [smem:[#allocation7 + $0x4f]]  ;;  %v515_v50 = vstv %s1379_s25  ;;  %v485_v31 = vmul.f32 %v484_v17, %v1190_v36 }
  0xb2   :  { %s1415_s8 = sld [smem:[#allocation8 + $0x8]]  ;;  %v516_v63 = vmul.f32 %v515_v50, %v1138_v57  ;;  %v519_v6 = vstv %s1383_s28  ;;  %v488_v34 = vstv %s1344_s18 }
  0xb3   :  { %v509_v53 = vadd.f32 %v508_v42, %v505_v46  ;;  %s1419_s22 = sld [smem:[#allocation7 + $0x50]]  ;;  %v520_v19 = vmul.f32 %v519_v6, %v1161_v13  ;;  %v523_v26 = vstv %s1388_s4  ;;  %v453_v42 = vstv %s1299_s24 }
  0xb4   :  { %s1424_s1 = sld [smem:[#allocation7 + $0x51]]  ;;  %v524_v45 = vmul.f32 %v523_v26, %v1176_v24  ;;  %v527_v49 = vstv %s1393_s9  ;;  %v486_v51 = vadd.f32 %v485_v31, %v482_v30  ;;  %v489_v1 = vmul.f32 %v488_v34, %v1196_v40 }
  0xb5   :  { %v513_v62 = vadd.f32 %v512_v47, %v509_v53  ;;  %s1429_s6 = sld [smem:[#allocation7 + $0x52]]  ;;  %v447_v47 = vadd.f32 %v446_v15, %v443_v23  ;;  %v531_v56 = vstv %s1398_s15  ;;  %v454_v60 = vmul.f32 %v453_v42, %v1254_v25 }
  0xb6   :  { %s1434_s10 = sld [smem:[#allocation7 + $0x53]]  ;;  %v490_v10 = vadd.f32 %v489_v1, %v486_v51  ;;  %v532_v14 = vmul.f32 %v531_v56, %v1196_v40 }
  0xb7   :  { %s1439_s29 = sld [smem:[#allocation7 + $0x54]]  ;;  %v517_v18 = vadd.f32 %v516_v63, %v513_v62  ;;  %v528_v62 = vmul.f32 %v527_v49, %v1190_v36  ;;  %v451_v4 = vadd.f32 %v450_v16, %v447_v47 }
  0xb8   :  { %s1444_s14 = sld [smem:[#allocation7 + $0x55]]  ;;  %v547_v22 = vstv %s1415_s8 }
  0xb9   :  { %v545_v20 = vstv %s1419_s22  ;;  %s1449_s20 = sld [smem:[#allocation7 + $0x56]]  ;;  %v521_v43 = vadd.f32 %v520_v19, %v517_v18 }
  0xba   :  { %v546_v28 = vmul.f32 %v545_v20, %v1089_v27  ;;  %v550_v29 = vstv %s1424_s1  ;;  %s1454_s13 = sld [smem:[#allocation7 + $0x57]] }
  0xbb   :  { %v551_v32 = vmul.f32 %v550_v29, %v1103_v35  ;;  %v554_v33 = vstv %s1429_s6  ;;  %s1459_s7 = sld [smem:[#allocation7 + $0x58]]  ;;  %v525_v61 = vadd.f32 %v524_v45, %v521_v43  ;;  %v539_v43 = vstv %s1409_s11 }
  0xbc   :  { %v548_v37 = vadd.f32 %v547_v22, %v546_v28  ;;  %v555_v38 = vmul.f32 %v554_v33, %v1114_v41  ;;  %v558_v39 = vstv %s1434_s10  ;;  %s1464_s30 = sld [smem:[#allocation7 + $0x59]]  ;;  %v535_v22 = vstv %s1403_s23 }
  0xbd   :  { %v562_v46 = vstv %s1439_s29  ;;  %s1469_s17 = sld [smem:[#allocation8 + $0x9]]  ;;  %v559_v50 = vmul.f32 %v558_v39, %v1138_v57  ;;  %v529_v20 = vadd.f32 %v528_v62, %v525_v61 }
  0xbe   :  { %v552_v0 = vadd.f32 %v551_v32, %v548_v37  ;;  %s1473_s12 = sld [smem:[#allocation7 + $0x5a]]  ;;  %v566_v53 = vstv %s1444_s14  ;;  %v563_v59 = vmul.f32 %v562_v46, %v1161_v13  ;;  %v494_v37 = vadd.f32 %v493_v5, %v490_v10 }
  0xbf   :  { %s1478_s24 = sld [smem:[#allocation7 + $0x5b]]  ;;  %v570_v63 = vstv %s1449_s20  ;;  %v567_v9 = vmul.f32 %v566_v53, %v1176_v24  ;;  %v455_v53 = vadd.f32 %v454_v60, %v451_v4 }
  0xc0   :  { %v556_v58 = vadd.f32 %v555_v38, %v552_v0  ;;  %s1484_s2 = sld [smem:[#allocation7 + $0x5c]]  ;;  %v574_v15 = vstv %s1454_s13  ;;  %v571_v16 = vmul.f32 %v570_v63, %v1190_v36  ;;  %v497_v38 = vmul.f32 %v496_v12, %v1254_v25 }
  0xc1   :  { %s1489_s21 = sld [smem:[#allocation7 + $0x5d]]  ;;  %v575_v29 = vmul.f32 %v574_v15, %v1196_v40  ;;  %v578_v32 = vstv %s1459_s7 }
  0xc2   :  { %v560_v6 = vadd.f32 %v559_v50, %v556_v58  ;;  %s1493_s16 = sld [smem:[#allocation7 + $0x5e]]  ;;  %v579_v47 = vmul.f32 %v578_v32, %v1235_v8  ;;  %v582_v49 = vstv %s1464_s30  ;;  %v498_v56 = vadd.f32 %v497_v38, %v494_v37 }
  0xc3   :  { %s1498_s18 = sld [smem:[#allocation7 + $0x5f]]  ;;  %v590_v19 = vstv %s1469_s17  ;;  %v583_v60 = vmul.f32 %v582_v49, %v1254_v25 }
  0xc4   :  { %v564_v17 = vadd.f32 %v563_v59, %v560_v6  ;;  %v588_v18 = vstv %s1473_s12  ;;  %s1503_s19 = sld [smem:[#allocation7 + $0x60]]  ;;  %v540_v59 = vmul.f32 %v539_v43, %v1254_v25 }
  0xc5   :  { %v589_v23 = vmul.f32 %v588_v18, %v1089_v27  ;;  %v593_v26 = vstv %s1478_s24  ;;  %s1508_s5 = sld [smem:[#allocation7 + $0x61]] }
  0xc6   :  { %v568_v28 = vadd.f32 %v567_v9, %v564_v17  ;;  %v594_v30 = vmul.f32 %v593_v26, %v1103_v35  ;;  %v597_v31 = vstv %s1484_s2  ;;  %s1513_s26 = sld [smem:[#allocation7 + $0x62]]  ;;  %v536_v35 = vmul.f32 %v535_v22, %v1235_v8 }
  0xc7   :  { %v591_v33 = vadd.f32 %v590_v19, %v589_v23  ;;  %v598_v34 = vmul.f32 %v597_v31, %v1114_v41  ;;  %v601_v27 = vstv %s1489_s21  ;;  %s1518_s3 = sld [smem:[#allocation7 + $0x63]]  ;;  %v533_v41 = vadd.f32 %v532_v14, %v529_v20 }
  0xc8   :  { %v572_v39 = vadd.f32 %v571_v16, %v568_v28  ;;  %v605_v42 = vstv %s1493_s16  ;;  %s1522_s27 = sld [smem:[#allocation10]]  ;;  %v602_v46 = vmul.f32 %v601_v27, %v1138_v57  ;;  %v413_v57 = vmax.f32 %v1480_v55, 0.0 }
  0xc9   :  { %v595_v45 = vadd.f32 %v594_v30, %v591_v33  ;;  %s1527_s0 = sld [smem:[#allocation10 + $0x1]]  ;;  %v609_v0 = vstv %s1498_s18  ;;  %v606_v1 = vmul.f32 %v605_v42, %v1161_v13  ;;  %v537_v55 = vadd.f32 %v536_v35, %v533_v41 }
  0xca   :  { %s1532_s25 = sld [smem:[#allocation10 + $0x2]]  ;;  %v576_v50 = vadd.f32 %v575_v29, %v572_v39  ;;  %v613_v52 = vstv %s1503_s19  ;;  %v610_v13 = vmul.f32 %v609_v0, %v1176_v24  ;;  %v456_v19 = vmax.f32 %v455_v53, 0.0 }
  0xcb   :  { %v599_v51 = vadd.f32 %v598_v34, %v595_v45  ;;  %s1536_s28 = sld [smem:[#allocation10 + $0x3]]  ;;  %v617_v62 = vstv %s1508_s5  ;;  %v614_v63 = vmul.f32 %v613_v52, %v1190_v36  ;;  %v541_v3 = vadd.f32 %v540_v59, %v537_v55 }
  0xcc   :  { %s1627_s15 = sld [smem:[#allocation29_spill]]  ;;  %v580_v5 = vadd.f32 %v579_v47, %v576_v50  ;;  %v618_v10 = vmul.f32 %v617_v62, %v1196_v40  ;;  %v621_v12 = vstv %s1513_s26  ;;  %v499_v23 = vmax.f32 %v498_v56, 0.0 }
  0xcd   :  { %s1542_s23 = sld [smem:[#allocation10 + $0x4]]  ;;  %v603_v61 = vadd.f32 %v602_v46, %v599_v51  ;;  %v622_v54 = vmul.f32 %v621_v12, %v1235_v8  ;;  %v542_v32 = vmax.f32 %v541_v3, 0.0 }
  0xce   :  { %s1547_s11 = sld [smem:[#allocation10 + $0x5]]  ;;  %v631_v4 = vstv %s1522_s27  ;;  %v584_v26 = vadd.f32 %v583_v60, %v580_v5 }
  0xcf   :  { %s1552_s8 = sld [smem:[#allocation10 + $0x6]]  ;;  %v607_v6 = vadd.f32 %v606_v1, %v603_v61  ;;  %v632_v9 = vmul.f32 %v631_v4, %v241_v21  ;;  %v636_v24 = vstv %s1527_s0  ;;  %v625_v21 = vstv %s1518_s3 }
  0xd0   :  { %v637_v14 = vmul.f32 %v636_v24, %v284_v11  ;;  %v640_v15 = vstv %s1532_s25  ;;  %s1562_s22 = sld [smem:[#allocation10 + $0x7]]  ;;  %v585_v37 = vmax.f32 %v584_v26, 0.0 }
  0xd1   :  { %v611_v36 = vadd.f32 %v610_v13, %v607_v6  ;;  %v641_v16 = vmul.f32 %v640_v15, %v327_v2  ;;  %v644_v18 = vstv %s1536_s28  ;;  %s823_s1 = sld [smem:[#allocation10 + $0x8]]  ;;  %v626_v2 = vmul.f32 %v625_v21, %v1254_v25 }
  0xd2   :  { %v633_v58 = vstv %s1627_s15  ;;  %v645_v22 = vmul.f32 %v644_v18, %v370_v7  ;;  %s824_s6 = sld [smem:[#allocation10 + $0x9]] }
  0xd3   :  { %v634_v17 = vadd.f32 %v633_v58, %v632_v9  ;;  %v648_v20 = vstv %s1542_s23  ;;  %v615_v40 = vadd.f32 %v614_v63, %v611_v36  ;;  %s1628_s14 = sld [smem:[#allocation30_spill]] }
  0xd4   :  { %v652_v28 = vstv %s1547_s11  ;;  %v649_v30 = vmul.f32 %v648_v20, %v413_v57 }
  0xd5   :  { %v638_v11 = vadd.f32 %v637_v14, %v634_v17  ;;  %v619_v44 = vadd.f32 %v618_v10, %v615_v40  ;;  %v656_v31 = vstv %s1552_s8  ;;  %v653_v27 = vmul.f32 %v652_v28, %v456_v19 }
  0xd6   :  { %v660_v8 = vstv %s1562_s22  ;;  %v657_v48 = vmul.f32 %v656_v31, %v499_v23 }
  0xd7   :  { %v642_v29 = vadd.f32 %v641_v16, %v638_v11  ;;  %v623_v33 = vadd.f32 %v622_v54, %v619_v44  ;;  %v664_v7 = vstv %s823_s1  ;;  %v661_v43 = vmul.f32 %v660_v8, %v542_v32 }
  0xd8   :  { %v668_v45 = vstv %s824_s6  ;;  %v665_v41 = vmul.f32 %v664_v7, %v585_v37 }
  0xd9   :  { %v646_v34 = vadd.f32 %v645_v22, %v642_v29  ;;  %v627_v38 = vadd.f32 %v626_v2, %v623_v33 }
  0xdb   :  { %v650_v39 = vadd.f32 %v649_v30, %v646_v34  ;;  %v628_v42 = vmax.f32 %v627_v38, 0.0 }
  0xdd   :  { %v654_v35 = vadd.f32 %v653_v27, %v650_v39  ;;  %v669_v47 = vmul.f32 %v668_v45, %v628_v42 }
  0xdf   :  { %v658_v46 = vadd.f32 %v657_v48, %v654_v35 }
  0xe1   :  { %v662_v25 = vadd.f32 %v661_v43, %v658_v46 }
  0xe3   :  { %v666_v49 = vadd.f32 %v665_v41, %v662_v25 }
  0xe5   :  { %v670_v0 = vadd.f32 %v669_v47, %v666_v49 }
  0xe7   :  { %671 = vst [vmem:[%s1628_s14] sm:$0xff] %v670_v0 }
  0xe8   :  { %676 = vsyncpa [#allocation4], 1 }
  0xe9   :  { %677 = vsyncpa [#allocation6], 1 }
  0xea   :  { %678 = vsyncpa [#allocation9], 1 }

</bundles_post_ra>
